<compile_context>
chip_gen: v6e
topology: v6e:2x2x1
jax: 0.10.0
libtpu: 0.0.40
codegen_flags: <defaults>
</compile_context>

<pallas_src>
import functools

import jax
import jax.numpy as jnp
import numpy as np
from jax.experimental import pallas as pl
from jax.experimental.pallas import tpu as pltpu


def _postnet_fused_kernel(x_ref,
                          w0_ref, w1_ref, w2_ref, w3_ref, w4_ref,
                          s0_ref, s1_ref, s2_ref, s3_ref, s4_ref,
                          o0_ref, o1_ref, o2_ref, o3_ref, o4_ref,
                          *, t_true, n_filts):
    """Fused 5-layer Postnet for one batch element.

    x_ref : (1, C_in0, Tp)      f32 input, zero for t >= t_true
    wX_ref: (C_outX, K*C_inX)   bf16 conv weight with BN scale folded in,
                                contraction rows ordered (k, c_in)
    sX_ref: (C_outX, 1)         f32 folded BN shift
    oX_ref: (1, C_outX, Tp)     f32 per-layer output
    """
    t_pad = x_ref.shape[-1]
    halo = (n_filts - 1) // 2
    # Columns >= t_true are forced to zero between layers so the padded tail
    # acts exactly like Conv1d's zero 'same' padding for the next layer.
    tmask = jax.lax.broadcasted_iota(jnp.int32, (1, t_pad), 1) < t_true

    def conv_bn_act(x, w_ref, s_ref, apply_tanh):
        # x: (C_in, Tp) f32, zero for t >= t_true.
        c_in = x.shape[0]
        zhalo = jnp.zeros((c_in, halo), dtype=x.dtype)
        xp = jnp.concatenate([zhalo, x, zhalo], axis=1)            # (C_in, Tp+2*halo)
        # im2col: rows ordered (k, c_in), matching the flattened weight layout.
        xcol = jnp.concatenate(
            [xp[:, k:k + t_pad] for k in range(n_filts)], axis=0)  # (K*C_in, Tp)
        # One deep MXU contraction, bf16 operands, f32 accumulation.
        y = jnp.dot(w_ref[...], xcol.astype(jnp.bfloat16),
                    preferred_element_type=jnp.float32)            # (C_out, Tp)
        y = y + s_ref[...]
        if apply_tanh:
            y = jnp.tanh(y)
        # Dropout is identity in eval mode.
        return jnp.where(tmask, y, 0.0)

    h = x_ref[0]                                                   # (C_in0, Tp) f32
    h = conv_bn_act(h, w0_ref, s0_ref, True);  o0_ref[0] = h.astype(o0_ref.dtype)
    h = conv_bn_act(h, w1_ref, s1_ref, True);  o1_ref[0] = h.astype(o1_ref.dtype)
    h = conv_bn_act(h, w2_ref, s2_ref, True);  o2_ref[0] = h.astype(o2_ref.dtype)
    h = conv_bn_act(h, w3_ref, s3_ref, True);  o3_ref[0] = h.astype(o3_ref.dtype)
    h = conv_bn_act(h, w4_ref, s4_ref, False); o4_ref[0] = h.astype(o4_ref.dtype)


def postnet_forward(xs, params, *, n_filts=5):
    """Fused Postnet forward. xs: (B, C_in0, T). Returns tuple of 5 outputs."""
    B, c_in0, T = xs.shape
    t_pad = max(128, ((T + 127) // 128) * 128)     # lane-dense time extent
    if t_pad != T:
        xs = jnp.pad(xs, ((0, 0), (0, 0), (0, t_pad - T)))

    ws = [p[0] for p in params]
    ss = [p[1] for p in params]
    c_outs = [int(w.shape[0]) for w in ws]

    kernel = functools.partial(_postnet_fused_kernel, t_true=T, n_filts=n_filts)

    out_shape = tuple(jax.ShapeDtypeStruct((B, co, t_pad), xs.dtype) for co in c_outs)
    out_specs = tuple(pl.BlockSpec((1, co, t_pad), lambda b: (b, 0, 0)) for co in c_outs)
    in_specs = (
        [pl.BlockSpec((1, c_in0, t_pad), lambda b: (b, 0, 0))]
        + [pl.BlockSpec(tuple(w.shape), lambda b: (0, 0)) for w in ws]   # resident
        + [pl.BlockSpec(tuple(s.shape), lambda b: (0, 0)) for s in ss]   # resident
    )

    outs = pl.pallas_call(
        kernel,
        out_shape=out_shape,
        grid=(B,),
        in_specs=in_specs,
        out_specs=out_specs,
        compiler_params=pltpu.CompilerParams(
            dimension_semantics=("parallel",)),
    )(xs, *ws, *ss)

    # TODO(synk): for very long sequences, tile the time axis (with a K-1 halo)
    # instead of holding the whole padded T in a single VMEM block.
    return tuple(o[:, :, :T] for o in outs)


def init_postnet_params(key, odim, n_chans, n_layers=5, n_filts=5):
    """Deterministic params matching the PyTorch module's shapes.

    Returns (folded, raw):
      folded[i] = (w_flat bf16 (C_out, K*C_in) with BN scale folded in,
                   shift f32 (C_out, 1))
      raw[i]    = (w f32 (C_out, C_in, K), scale f32 (C_out,), shift f32 (C_out,))
    """
    eps = 1e-5
    folded, raw = [], []
    for layer in range(n_layers):
        ichans = odim if layer == 0 else n_chans
        ochans = odim if layer == n_layers - 1 else n_chans
        key, kw, kg, kb, km, kv = jax.random.split(key, 6)
        w = jax.random.normal(kw, (ochans, ichans, n_filts), jnp.float32) * 0.05
        gamma = 1.0 + 0.1 * jax.random.normal(kg, (ochans,), jnp.float32)
        beta = 0.1 * jax.random.normal(kb, (ochans,), jnp.float32)
        mean = 0.1 * jax.random.normal(km, (ochans,), jnp.float32)
        var = jnp.abs(1.0 + 0.1 * jax.random.normal(kv, (ochans,), jnp.float32))
        # Fold eval-mode BatchNorm into per-channel scale/shift.
        scale = gamma / jnp.sqrt(var + eps)
        shift = beta - mean * scale
        # Fold scale into the conv weight; flatten to (C_out, K*C_in) with the
        # contraction ordered (k, c_in) and C_in last (lane-dense MXU LHS).
        w_folded = scale[:, None, None] * w                         # (Co, Ci, K)
        w_flat = jnp.transpose(w_folded, (0, 2, 1)).reshape(ochans, n_filts * ichans)
        folded.append((w_flat.astype(jnp.bfloat16), shift[:, None]))
        raw.append((w, scale, shift))
    return folded, raw


def postnet_reference(xs, raw_params):
    """Pure-JAX f32 reference (Conv1d 'same' + folded eval BN + tanh)."""
    n_layers = len(raw_params)
    outs, h = [], xs
    for i, (w, scale, shift) in enumerate(raw_params):
        pad = (w.shape[-1] - 1) // 2
        y = jax.lax.conv_general_dilated(
            h, w, window_strides=(1,), padding=[(pad, pad)],
            dimension_numbers=("NCH", "OIH", "NCH"))
        y = y * scale[None, :, None] + shift[None, :, None]
        if i != n_layers - 1:
            y = jnp.tanh(y)
        outs.append(y)
        h = y
    return tuple(outs)


if __name__ == "__main__":
    # Small, Conv1d-consistent shapes: B=2, odim=8, n_chans=32, Tmax=16.
    B, odim, n_chans, T = 2, 8, 32, 16
    n_layers, n_filts = 5, 5
    key = jax.random.PRNGKey(0)
    kx, kp = jax.random.split(key)
    xs = jax.random.normal(kx, (B, odim, T), jnp.float32)
    params, raw_params = init_postnet_params(kp, odim=odim, n_chans=n_chans,
                                             n_layers=n_layers, n_filts=n_filts)

    outs = postnet_forward(xs, params, n_filts=n_filts)
    outs = jax.block_until_ready(outs)

    # Shapes: (B, n_chans, T) x4 and final (B, odim, T), like the PyTorch module.
    assert outs[0].shape == (B, n_chans, T)
    assert outs[3].shape == (B, n_chans, T)
    assert outs[4].shape == (B, odim, T)

    # Correctness vs. a pure-JAX f32 reference (bf16 matmul operands => loose tol).
    refs = postnet_reference(xs, raw_params)
    for o, r in zip(outs, refs):
        np.testing.assert_allclose(np.asarray(o), np.asarray(r), atol=5e-2, rtol=0)

    print("KERNEL_OK")
</pallas_src>

<mosaic_0001>
module attributes {stable_mosaic.version = 11 : i64} {
  func.func @_postnet_fused_kernel(%arg0: i32, %arg1: memref<1x8x128xf32, #tpu.memory_space<vmem>>, %arg2: memref<32x40xbf16, #tpu.memory_space<vmem>>, %arg3: memref<32x160xbf16, #tpu.memory_space<vmem>>, %arg4: memref<32x160xbf16, #tpu.memory_space<vmem>>, %arg5: memref<32x160xbf16, #tpu.memory_space<vmem>>, %arg6: memref<8x160xbf16, #tpu.memory_space<vmem>>, %arg7: memref<32x1xf32, #tpu.memory_space<vmem>>, %arg8: memref<32x1xf32, #tpu.memory_space<vmem>>, %arg9: memref<32x1xf32, #tpu.memory_space<vmem>>, %arg10: memref<32x1xf32, #tpu.memory_space<vmem>>, %arg11: memref<8x1xf32, #tpu.memory_space<vmem>>, %arg12: memref<1x32x128xf32, #tpu.memory_space<vmem>>, %arg13: memref<1x32x128xf32, #tpu.memory_space<vmem>>, %arg14: memref<1x32x128xf32, #tpu.memory_space<vmem>>, %arg15: memref<1x32x128xf32, #tpu.memory_space<vmem>>, %arg16: memref<1x8x128xf32, #tpu.memory_space<vmem>>) attributes {dimension_semantics = [#tpu.dimension_semantics<parallel>], iteration_bounds = array<i64: 2>, scalar_prefetch = 0 : i64, scratch_operands = 0 : i64, tpu.core_type = #tpu.core_type<tc>, window_params = [{transform_indices = @transform_0, window_bounds = array<i64: 1, 8, 128>}, {pipeline_mode = #tpu.pipeline_mode<synchronous>, transform_indices = @transform_1, window_bounds = array<i64: 32, 40>}, {pipeline_mode = #tpu.pipeline_mode<synchronous>, transform_indices = @transform_2, window_bounds = array<i64: 32, 160>}, {pipeline_mode = #tpu.pipeline_mode<synchronous>, transform_indices = @transform_3, window_bounds = array<i64: 32, 160>}, {pipeline_mode = #tpu.pipeline_mode<synchronous>, transform_indices = @transform_4, window_bounds = array<i64: 32, 160>}, {pipeline_mode = #tpu.pipeline_mode<synchronous>, transform_indices = @transform_5, window_bounds = array<i64: 8, 160>}, {pipeline_mode = #tpu.pipeline_mode<synchronous>, transform_indices = @transform_6, window_bounds = array<i64: 32, 1>}, {pipeline_mode = #tpu.pipeline_mode<synchronous>, transform_indices = @transform_7, window_bounds = array<i64: 32, 1>}, {pipeline_mode = #tpu.pipeline_mode<synchronous>, transform_indices = @transform_8, window_bounds = array<i64: 32, 1>}, {pipeline_mode = #tpu.pipeline_mode<synchronous>, transform_indices = @transform_9, window_bounds = array<i64: 32, 1>}, {pipeline_mode = #tpu.pipeline_mode<synchronous>, transform_indices = @transform_10, window_bounds = array<i64: 8, 1>}, {transform_indices = @transform_11, window_bounds = array<i64: 1, 32, 128>}, {transform_indices = @transform_12, window_bounds = array<i64: 1, 32, 128>}, {transform_indices = @transform_13, window_bounds = array<i64: 1, 32, 128>}, {transform_indices = @transform_14, window_bounds = array<i64: 1, 32, 128>}, {transform_indices = @transform_15, window_bounds = array<i64: 1, 8, 128>}]} {
    %0 = tpu.iota {dimensions = array<i32: 1>} : vector<1x128xi32>
    %c16_i32 = arith.constant 16 : i32
    %1 = vector.broadcast %c16_i32 : i32 to vector<1x128xi32>
    %2 = arith.cmpi slt, %0, %1 : vector<1x128xi32>
    %c0 = arith.constant 0 : index
    %c0_0 = arith.constant 0 : index
    %c0_1 = arith.constant 0 : index
    %3 = vector.load %arg1[%c0, %c0_0, %c0_1] : memref<1x8x128xf32, #tpu.memory_space<vmem>>, vector<1x8x128xf32>
    %4 = vector.shape_cast %3 : vector<1x8x128xf32> to vector<8x128xf32>
    %cst = arith.constant 0.000000e+00 : f32
    %5 = vector.broadcast %cst : f32 to vector<8x2xf32>
    %6 = tpu.concatenate %5, %4, %5 in 1 : vector<8x2xf32>, vector<8x128xf32>, vector<8x2xf32> -> vector<8x132xf32>
    %7 = vector.extract_strided_slice %6 {offsets = [0, 0], sizes = [8, 128], strides = [1, 1]} : vector<8x132xf32> to vector<8x128xf32>
    %8 = vector.extract_strided_slice %6 {offsets = [0, 1], sizes = [8, 128], strides = [1, 1]} : vector<8x132xf32> to vector<8x128xf32>
    %9 = vector.extract_strided_slice %6 {offsets = [0, 2], sizes = [8, 128], strides = [1, 1]} : vector<8x132xf32> to vector<8x128xf32>
    %10 = vector.extract_strided_slice %6 {offsets = [0, 3], sizes = [8, 128], strides = [1, 1]} : vector<8x132xf32> to vector<8x128xf32>
    %11 = vector.extract_strided_slice %6 {offsets = [0, 4], sizes = [8, 128], strides = [1, 1]} : vector<8x132xf32> to vector<8x128xf32>
    %12 = tpu.concatenate %7, %8, %9, %10, %11 in 0 : vector<8x128xf32>, vector<8x128xf32>, vector<8x128xf32>, vector<8x128xf32>, vector<8x128xf32> -> vector<40x128xf32>
    %c0_2 = arith.constant 0 : index
    %c0_3 = arith.constant 0 : index
    %13 = vector.load %arg2[%c0_2, %c0_3] : memref<32x40xbf16, #tpu.memory_space<vmem>>, vector<32x40xbf16>
    %14 = arith.truncf %12 : vector<40x128xf32> to vector<40x128xbf16>
    %cst_4 = arith.constant dense<0.000000e+00> : vector<32x128xf32>
    %15 = tpu.matmul %13, %14, %cst_4 {dimension_numbers = #tpu.dot_dimension_numbers<[1], [0], [0], [1], [0, 0, 1, 1], [], []>} : vector<32x40xbf16>, vector<40x128xbf16>, vector<32x128xf32> -> vector<32x128xf32>
    %c0_5 = arith.constant 0 : index
    %c0_6 = arith.constant 0 : index
    %16 = vector.load %arg7[%c0_5, %c0_6] : memref<32x1xf32, #tpu.memory_space<vmem>>, vector<32x1xf32>
    %17 = vector.broadcast %16 : vector<32x1xf32> to vector<32x128xf32>
    %18 = arith.addf %15, %17 : vector<32x128xf32>
    %19 = math.tanh %18 : vector<32x128xf32>
    %cst_7 = arith.constant 0.000000e+00 : f32
    %20 = vector.shape_cast %2 : vector<1x128xi1> to vector<1x128xi1>
    %21 = vector.broadcast %20 : vector<1x128xi1> to vector<32x128xi1>
    %22 = vector.broadcast %cst_7 : f32 to vector<32x128xf32>
    %23 = arith.select %21, %19, %22 : vector<32x128xi1>, vector<32x128xf32>
    %c0_8 = arith.constant 0 : index
    %c0_9 = arith.constant 0 : index
    %c0_10 = arith.constant 0 : index
    %24 = vector.load %arg12[%c0_8, %c0_9, %c0_10] : memref<1x32x128xf32, #tpu.memory_space<vmem>>, vector<1x32x128xf32>
    %25 = vector.shape_cast %24 : vector<1x32x128xf32> to vector<32x128xf32>
    %26 = vector.shape_cast %23 : vector<32x128xf32> to vector<1x32x128xf32>
    tpu.vector_store %arg12[%c0_8, %c0_9, %c0_10], %26 {strides = array<i32>} : memref<1x32x128xf32, #tpu.memory_space<vmem>>, vector<1x32x128xf32>,
    %cst_11 = arith.constant 0.000000e+00 : f32
    %27 = vector.broadcast %cst_11 : f32 to vector<32x2xf32>
    %28 = tpu.concatenate %27, %23, %27 in 1 : vector<32x2xf32>, vector<32x128xf32>, vector<32x2xf32> -> vector<32x132xf32>
    %29 = vector.extract_strided_slice %28 {offsets = [0, 0], sizes = [32, 128], strides = [1, 1]} : vector<32x132xf32> to vector<32x128xf32>
    %30 = vector.extract_strided_slice %28 {offsets = [0, 1], sizes = [32, 128], strides = [1, 1]} : vector<32x132xf32> to vector<32x128xf32>
    %31 = vector.extract_strided_slice %28 {offsets = [0, 2], sizes = [32, 128], strides = [1, 1]} : vector<32x132xf32> to vector<32x128xf32>
    %32 = vector.extract_strided_slice %28 {offsets = [0, 3], sizes = [32, 128], strides = [1, 1]} : vector<32x132xf32> to vector<32x128xf32>
    %33 = vector.extract_strided_slice %28 {offsets = [0, 4], sizes = [32, 128], strides = [1, 1]} : vector<32x132xf32> to vector<32x128xf32>
    %34 = tpu.concatenate %29, %30, %31, %32, %33 in 0 : vector<32x128xf32>, vector<32x128xf32>, vector<32x128xf32>, vector<32x128xf32>, vector<32x128xf32> -> vector<160x128xf32>
    %c0_12 = arith.constant 0 : index
    %c0_13 = arith.constant 0 : index
    %35 = vector.load %arg3[%c0_12, %c0_13] : memref<32x160xbf16, #tpu.memory_space<vmem>>, vector<32x160xbf16>
    %36 = arith.truncf %34 : vector<160x128xf32> to vector<160x128xbf16>
    %cst_14 = arith.constant dense<0.000000e+00> : vector<32x128xf32>
    %37 = tpu.matmul %35, %36, %cst_14 {dimension_numbers = #tpu.dot_dimension_numbers<[1], [0], [0], [1], [0, 0, 1, 1], [], []>} : vector<32x160xbf16>, vector<160x128xbf16>, vector<32x128xf32> -> vector<32x128xf32>
    %c0_15 = arith.constant 0 : index
    %c0_16 = arith.constant 0 : index
    %38 = vector.load %arg8[%c0_15, %c0_16] : memref<32x1xf32, #tpu.memory_space<vmem>>, vector<32x1xf32>
    %39 = vector.broadcast %38 : vector<32x1xf32> to vector<32x128xf32>
    %40 = arith.addf %37, %39 : vector<32x128xf32>
    %41 = math.tanh %40 : vector<32x128xf32>
    %cst_17 = arith.constant 0.000000e+00 : f32
    %42 = vector.shape_cast %2 : vector<1x128xi1> to vector<1x128xi1>
    %43 = vector.broadcast %42 : vector<1x128xi1> to vector<32x128xi1>
    %44 = vector.broadcast %cst_17 : f32 to vector<32x128xf32>
    %45 = arith.select %43, %41, %44 : vector<32x128xi1>, vector<32x128xf32>
    %c0_18 = arith.constant 0 : index
    %c0_19 = arith.constant 0 : index
    %c0_20 = arith.constant 0 : index
    %46 = vector.load %arg13[%c0_18, %c0_19, %c0_20] : memref<1x32x128xf32, #tpu.memory_space<vmem>>, vector<1x32x128xf32>
    %47 = vector.shape_cast %46 : vector<1x32x128xf32> to vector<32x128xf32>
    %48 = vector.shape_cast %45 : vector<32x128xf32> to vector<1x32x128xf32>
    tpu.vector_store %arg13[%c0_18, %c0_19, %c0_20], %48 {strides = array<i32>} : memref<1x32x128xf32, #tpu.memory_space<vmem>>, vector<1x32x128xf32>,
    %cst_21 = arith.constant 0.000000e+00 : f32
    %49 = vector.broadcast %cst_21 : f32 to vector<32x2xf32>
    %50 = tpu.concatenate %49, %45, %49 in 1 : vector<32x2xf32>, vector<32x128xf32>, vector<32x2xf32> -> vector<32x132xf32>
    %51 = vector.extract_strided_slice %50 {offsets = [0, 0], sizes = [32, 128], strides = [1, 1]} : vector<32x132xf32> to vector<32x128xf32>
    %52 = vector.extract_strided_slice %50 {offsets = [0, 1], sizes = [32, 128], strides = [1, 1]} : vector<32x132xf32> to vector<32x128xf32>
    %53 = vector.extract_strided_slice %50 {offsets = [0, 2], sizes = [32, 128], strides = [1, 1]} : vector<32x132xf32> to vector<32x128xf32>
    %54 = vector.extract_strided_slice %50 {offsets = [0, 3], sizes = [32, 128], strides = [1, 1]} : vector<32x132xf32> to vector<32x128xf32>
    %55 = vector.extract_strided_slice %50 {offsets = [0, 4], sizes = [32, 128], strides = [1, 1]} : vector<32x132xf32> to vector<32x128xf32>
    %56 = tpu.concatenate %51, %52, %53, %54, %55 in 0 : vector<32x128xf32>, vector<32x128xf32>, vector<32x128xf32>, vector<32x128xf32>, vector<32x128xf32> -> vector<160x128xf32>
    %c0_22 = arith.constant 0 : index
    %c0_23 = arith.constant 0 : index
    %57 = vector.load %arg4[%c0_22, %c0_23] : memref<32x160xbf16, #tpu.memory_space<vmem>>, vector<32x160xbf16>
    %58 = arith.truncf %56 : vector<160x128xf32> to vector<160x128xbf16>
    %cst_24 = arith.constant dense<0.000000e+00> : vector<32x128xf32>
    %59 = tpu.matmul %57, %58, %cst_24 {dimension_numbers = #tpu.dot_dimension_numbers<[1], [0], [0], [1], [0, 0, 1, 1], [], []>} : vector<32x160xbf16>, vector<160x128xbf16>, vector<32x128xf32> -> vector<32x128xf32>
    %c0_25 = arith.constant 0 : index
    %c0_26 = arith.constant 0 : index
    %60 = vector.load %arg9[%c0_25, %c0_26] : memref<32x1xf32, #tpu.memory_space<vmem>>, vector<32x1xf32>
    %61 = vector.broadcast %60 : vector<32x1xf32> to vector<32x128xf32>
    %62 = arith.addf %59, %61 : vector<32x128xf32>
    %63 = math.tanh %62 : vector<32x128xf32>
    %cst_27 = arith.constant 0.000000e+00 : f32
    %64 = vector.shape_cast %2 : vector<1x128xi1> to vector<1x128xi1>
    %65 = vector.broadcast %64 : vector<1x128xi1> to vector<32x128xi1>
    %66 = vector.broadcast %cst_27 : f32 to vector<32x128xf32>
    %67 = arith.select %65, %63, %66 : vector<32x128xi1>, vector<32x128xf32>
    %c0_28 = arith.constant 0 : index
    %c0_29 = arith.constant 0 : index
    %c0_30 = arith.constant 0 : index
    %68 = vector.load %arg14[%c0_28, %c0_29, %c0_30] : memref<1x32x128xf32, #tpu.memory_space<vmem>>, vector<1x32x128xf32>
    %69 = vector.shape_cast %68 : vector<1x32x128xf32> to vector<32x128xf32>
    %70 = vector.shape_cast %67 : vector<32x128xf32> to vector<1x32x128xf32>
    tpu.vector_store %arg14[%c0_28, %c0_29, %c0_30], %70 {strides = array<i32>} : memref<1x32x128xf32, #tpu.memory_space<vmem>>, vector<1x32x128xf32>,
    %cst_31 = arith.constant 0.000000e+00 : f32
    %71 = vector.broadcast %cst_31 : f32 to vector<32x2xf32>
    %72 = tpu.concatenate %71, %67, %71 in 1 : vector<32x2xf32>, vector<32x128xf32>, vector<32x2xf32> -> vector<32x132xf32>
    %73 = vector.extract_strided_slice %72 {offsets = [0, 0], sizes = [32, 128], strides = [1, 1]} : vector<32x132xf32> to vector<32x128xf32>
    %74 = vector.extract_strided_slice %72 {offsets = [0, 1], sizes = [32, 128], strides = [1, 1]} : vector<32x132xf32> to vector<32x128xf32>
    %75 = vector.extract_strided_slice %72 {offsets = [0, 2], sizes = [32, 128], strides = [1, 1]} : vector<32x132xf32> to vector<32x128xf32>
    %76 = vector.extract_strided_slice %72 {offsets = [0, 3], sizes = [32, 128], strides = [1, 1]} : vector<32x132xf32> to vector<32x128xf32>
    %77 = vector.extract_strided_slice %72 {offsets = [0, 4], sizes = [32, 128], strides = [1, 1]} : vector<32x132xf32> to vector<32x128xf32>
    %78 = tpu.concatenate %73, %74, %75, %76, %77 in 0 : vector<32x128xf32>, vector<32x128xf32>, vector<32x128xf32>, vector<32x128xf32>, vector<32x128xf32> -> vector<160x128xf32>
    %c0_32 = arith.constant 0 : index
    %c0_33 = arith.constant 0 : index
    %79 = vector.load %arg5[%c0_32, %c0_33] : memref<32x160xbf16, #tpu.memory_space<vmem>>, vector<32x160xbf16>
    %80 = arith.truncf %78 : vector<160x128xf32> to vector<160x128xbf16>
    %cst_34 = arith.constant dense<0.000000e+00> : vector<32x128xf32>
    %81 = tpu.matmul %79, %80, %cst_34 {dimension_numbers = #tpu.dot_dimension_numbers<[1], [0], [0], [1], [0, 0, 1, 1], [], []>} : vector<32x160xbf16>, vector<160x128xbf16>, vector<32x128xf32> -> vector<32x128xf32>
    %c0_35 = arith.constant 0 : index
    %c0_36 = arith.constant 0 : index
    %82 = vector.load %arg10[%c0_35, %c0_36] : memref<32x1xf32, #tpu.memory_space<vmem>>, vector<32x1xf32>
    %83 = vector.broadcast %82 : vector<32x1xf32> to vector<32x128xf32>
    %84 = arith.addf %81, %83 : vector<32x128xf32>
    %85 = math.tanh %84 : vector<32x128xf32>
    %cst_37 = arith.constant 0.000000e+00 : f32
    %86 = vector.shape_cast %2 : vector<1x128xi1> to vector<1x128xi1>
    %87 = vector.broadcast %86 : vector<1x128xi1> to vector<32x128xi1>
    %88 = vector.broadcast %cst_37 : f32 to vector<32x128xf32>
    %89 = arith.select %87, %85, %88 : vector<32x128xi1>, vector<32x128xf32>
    %c0_38 = arith.constant 0 : index
    %c0_39 = arith.constant 0 : index
    %c0_40 = arith.constant 0 : index
    %90 = vector.load %arg15[%c0_38, %c0_39, %c0_40] : memref<1x32x128xf32, #tpu.memory_space<vmem>>, vector<1x32x128xf32>
    %91 = vector.shape_cast %90 : vector<1x32x128xf32> to vector<32x128xf32>
    %92 = vector.shape_cast %89 : vector<32x128xf32> to vector<1x32x128xf32>
    tpu.vector_store %arg15[%c0_38, %c0_39, %c0_40], %92 {strides = array<i32>} : memref<1x32x128xf32, #tpu.memory_space<vmem>>, vector<1x32x128xf32>,
    %cst_41 = arith.constant 0.000000e+00 : f32
    %93 = vector.broadcast %cst_41 : f32 to vector<32x2xf32>
    %94 = tpu.concatenate %93, %89, %93 in 1 : vector<32x2xf32>, vector<32x128xf32>, vector<32x2xf32> -> vector<32x132xf32>
    %95 = vector.extract_strided_slice %94 {offsets = [0, 0], sizes = [32, 128], strides = [1, 1]} : vector<32x132xf32> to vector<32x128xf32>
    %96 = vector.extract_strided_slice %94 {offsets = [0, 1], sizes = [32, 128], strides = [1, 1]} : vector<32x132xf32> to vector<32x128xf32>
    %97 = vector.extract_strided_slice %94 {offsets = [0, 2], sizes = [32, 128], strides = [1, 1]} : vector<32x132xf32> to vector<32x128xf32>
    %98 = vector.extract_strided_slice %94 {offsets = [0, 3], sizes = [32, 128], strides = [1, 1]} : vector<32x132xf32> to vector<32x128xf32>
    %99 = vector.extract_strided_slice %94 {offsets = [0, 4], sizes = [32, 128], strides = [1, 1]} : vector<32x132xf32> to vector<32x128xf32>
    %100 = tpu.concatenate %95, %96, %97, %98, %99 in 0 : vector<32x128xf32>, vector<32x128xf32>, vector<32x128xf32>, vector<32x128xf32>, vector<32x128xf32> -> vector<160x128xf32>
    %c0_42 = arith.constant 0 : index
    %c0_43 = arith.constant 0 : index
    %101 = vector.load %arg6[%c0_42, %c0_43] : memref<8x160xbf16, #tpu.memory_space<vmem>>, vector<8x160xbf16>
    %102 = arith.truncf %100 : vector<160x128xf32> to vector<160x128xbf16>
    %cst_44 = arith.constant dense<0.000000e+00> : vector<8x128xf32>
    %103 = tpu.matmul %101, %102, %cst_44 {dimension_numbers = #tpu.dot_dimension_numbers<[1], [0], [0], [1], [0, 0, 1, 1], [], []>} : vector<8x160xbf16>, vector<160x128xbf16>, vector<8x128xf32> -> vector<8x128xf32>
    %c0_45 = arith.constant 0 : index
    %c0_46 = arith.constant 0 : index
    %104 = vector.load %arg11[%c0_45, %c0_46] : memref<8x1xf32, #tpu.memory_space<vmem>>, vector<8x1xf32>
    %105 = vector.broadcast %104 : vector<8x1xf32> to vector<8x128xf32>
    %106 = arith.addf %103, %105 : vector<8x128xf32>
    %cst_47 = arith.constant 0.000000e+00 : f32
    %107 = vector.shape_cast %2 : vector<1x128xi1> to vector<1x128xi1>
    %108 = vector.broadcast %107 : vector<1x128xi1> to vector<8x128xi1>
    %109 = vector.broadcast %cst_47 : f32 to vector<8x128xf32>
    %110 = arith.select %108, %106, %109 : vector<8x128xi1>, vector<8x128xf32>
    %c0_48 = arith.constant 0 : index
    %c0_49 = arith.constant 0 : index
    %c0_50 = arith.constant 0 : index
    %111 = vector.load %arg16[%c0_48, %c0_49, %c0_50] : memref<1x8x128xf32, #tpu.memory_space<vmem>>, vector<1x8x128xf32>
    %112 = vector.shape_cast %111 : vector<1x8x128xf32> to vector<8x128xf32>
    %113 = vector.shape_cast %110 : vector<8x128xf32> to vector<1x8x128xf32>
    tpu.vector_store %arg16[%c0_48, %c0_49, %c0_50], %113 {strides = array<i32>} : memref<1x8x128xf32, #tpu.memory_space<vmem>>, vector<1x8x128xf32>,
    return
  }
  func.func @transform_0(%arg0: i32) -> (i32, i32, i32) {
    %c0_i32 = arith.constant 0 : i32
    %c0_i32_0 = arith.constant 0 : i32
    %c0_i32_1 = arith.constant 0 : i32
    return %arg0, %c0_i32, %c0_i32_0 : i32, i32, i32
  }
  func.func @transform_1(%arg0: i32) -> (i32, i32) {
    %c0_i32 = arith.constant 0 : i32
    %c0_i32_0 = arith.constant 0 : i32
    %c0_i32_1 = arith.constant 0 : i32
    return %c0_i32, %c0_i32_0 : i32, i32
  }
  func.func @transform_2(%arg0: i32) -> (i32, i32) {
    %c0_i32 = arith.constant 0 : i32
    %c0_i32_0 = arith.constant 0 : i32
    %c0_i32_1 = arith.constant 0 : i32
    return %c0_i32, %c0_i32_0 : i32, i32
  }
  func.func @transform_3(%arg0: i32) -> (i32, i32) {
    %c0_i32 = arith.constant 0 : i32
    %c0_i32_0 = arith.constant 0 : i32
    %c0_i32_1 = arith.constant 0 : i32
    return %c0_i32, %c0_i32_0 : i32, i32
  }
  func.func @transform_4(%arg0: i32) -> (i32, i32) {
    %c0_i32 = arith.constant 0 : i32
    %c0_i32_0 = arith.constant 0 : i32
    %c0_i32_1 = arith.constant 0 : i32
    return %c0_i32, %c0_i32_0 : i32, i32
  }
  func.func @transform_5(%arg0: i32) -> (i32, i32) {
    %c0_i32 = arith.constant 0 : i32
    %c0_i32_0 = arith.constant 0 : i32
    %c0_i32_1 = arith.constant 0 : i32
    return %c0_i32, %c0_i32_0 : i32, i32
  }
  func.func @transform_6(%arg0: i32) -> (i32, i32) {
    %c0_i32 = arith.constant 0 : i32
    %c0_i32_0 = arith.constant 0 : i32
    %c0_i32_1 = arith.constant 0 : i32
    return %c0_i32, %c0_i32_0 : i32, i32
  }
  func.func @transform_7(%arg0: i32) -> (i32, i32) {
    %c0_i32 = arith.constant 0 : i32
    %c0_i32_0 = arith.constant 0 : i32
    %c0_i32_1 = arith.constant 0 : i32
    return %c0_i32, %c0_i32_0 : i32, i32
  }
  func.func @transform_8(%arg0: i32) -> (i32, i32) {
    %c0_i32 = arith.constant 0 : i32
    %c0_i32_0 = arith.constant 0 : i32
    %c0_i32_1 = arith.constant 0 : i32
    return %c0_i32, %c0_i32_0 : i32, i32
  }
  func.func @transform_9(%arg0: i32) -> (i32, i32) {
    %c0_i32 = arith.constant 0 : i32
    %c0_i32_0 = arith.constant 0 : i32
    %c0_i32_1 = arith.constant 0 : i32
    return %c0_i32, %c0_i32_0 : i32, i32
  }
  func.func @transform_10(%arg0: i32) -> (i32, i32) {
    %c0_i32 = arith.constant 0 : i32
    %c0_i32_0 = arith.constant 0 : i32
    %c0_i32_1 = arith.constant 0 : i32
    return %c0_i32, %c0_i32_0 : i32, i32
  }
  func.func @transform_11(%arg0: i32) -> (i32, i32, i32) {
    %c0_i32 = arith.constant 0 : i32
    %c0_i32_0 = arith.constant 0 : i32
    %c0_i32_1 = arith.constant 0 : i32
    return %arg0, %c0_i32, %c0_i32_0 : i32, i32, i32
  }
  func.func @transform_12(%arg0: i32) -> (i32, i32, i32) {
    %c0_i32 = arith.constant 0 : i32
    %c0_i32_0 = arith.constant 0 : i32
    %c0_i32_1 = arith.constant 0 : i32
    return %arg0, %c0_i32, %c0_i32_0 : i32, i32, i32
  }
  func.func @transform_13(%arg0: i32) -> (i32, i32, i32) {
    %c0_i32 = arith.constant 0 : i32
    %c0_i32_0 = arith.constant 0 : i32
    %c0_i32_1 = arith.constant 0 : i32
    return %arg0, %c0_i32, %c0_i32_0 : i32, i32, i32
  }
  func.func @transform_14(%arg0: i32) -> (i32, i32, i32) {
    %c0_i32 = arith.constant 0 : i32
    %c0_i32_0 = arith.constant 0 : i32
    %c0_i32_1 = arith.constant 0 : i32
    return %arg0, %c0_i32, %c0_i32_0 : i32, i32, i32
  }
  func.func @transform_15(%arg0: i32) -> (i32, i32, i32) {
    %c0_i32 = arith.constant 0 : i32
    %c0_i32_0 = arith.constant 0 : i32
    %c0_i32_1 = arith.constant 0 : i32
    return %arg0, %c0_i32, %c0_i32_0 : i32, i32, i32
  }
}

</mosaic_0001>

<bundles_post_ra>
// kernel: tpu_custom_call.1
= control target key start
LH: loop header
LB: loop body
LE: loop exit
PB: predicated region body
PF: predicated region fallthrough
CT: control target
= control target key end

     0   :  { %s3577_s0 = inlined_call_operand.vmem [shape: f32[2,8,128], index: 0, kind: input, shape index: {}]   ;;  %s3578_s1 = inlined_call_operand.vmem [shape: bf16[32,40], index: 1, kind: input, shape index: {}]   ;;  %s3579_s2 = inlined_call_operand.vmem [shape: bf16[32,160], index: 2, kind: input, shape index: {}]   ;;  %s3580_s3 = inlined_call_operand.vmem [shape: bf16[32,160], index: 3, kind: input, shape index: {}]   ;;  %s3581_s4 = inlined_call_operand.vmem [shape: bf16[32,160], index: 4, kind: input, shape index: {}]   ;;  %s3582_s5 = inlined_call_operand.vmem [shape: bf16[8,160], index: 5, kind: input, shape index: {}]   ;;  %s3583_s6 = inlined_call_operand.vmem [shape: f32[32,1], index: 6, kind: input, shape index: {}]   ;;  %s3584_s7 = inlined_call_operand.vmem [shape: f32[32,1], index: 7, kind: input, shape index: {}]   ;;  %s3585_s8 = inlined_call_operand.vmem [shape: f32[32,1], index: 8, kind: input, shape index: {}]   ;;  %s3586_s9 = inlined_call_operand.vmem [shape: f32[32,1], index: 9, kind: input, shape index: {}]   ;;  %s3587_s10 = inlined_call_operand.vmem [shape: f32[8,1], index: 10, kind: input, shape index: {}]   ;;  %s3588_s11 = inlined_call_operand.hbm [shape: f32[2,32,128], index: 11, kind: output, shape index: {0}]   ;;  %s3589_s12 = inlined_call_operand.hbm [shape: f32[2,32,128], index: 12, kind: output, shape index: {1}]   ;;  %s3590_s13 = inlined_call_operand.hbm [shape: f32[2,32,128], index: 13, kind: output, shape index: {2}]   ;;  %s3591_s14 = inlined_call_operand.hbm [shape: f32[2,32,128], index: 14, kind: output, shape index: {3}]   ;;  %s3592_s15 = inlined_call_operand.hbm [shape: f32[2,8,128], index: 15, kind: output, shape index: {4}]  }
   0x1   :  { %3613 = sst [smem:[#allocation20_spill]] %s3577_s0 }
   0x2   :  { %3614 = sst [smem:[#allocation21_spill]] %s3578_s1 }
   0x3   :  { %3615 = sst [smem:[#allocation22_spill]] %s3579_s2 }
   0x4   :  { %3616 = sst [smem:[#allocation23_spill]] %s3580_s3 }
   0x5   :  { %3617 = sst [smem:[#allocation24_spill]] %s3583_s6 }
   0x6   :  { %3618 = sst [smem:[#allocation25_spill]] %s3584_s7 }
   0x7   :  { %3619 = sst [smem:[#allocation26_spill]] %s3592_s15 }
   0x8   :  { %21 = vsyncpa [#allocation3], 0 }
   0x9   :  { %23 = vsyncpa [#allocation3 + $0x1], 0 }
   0xa   :  { %24 = vsyncpa [#allocation5], 0 }
   0xb   :  { %26 = vsyncpa [#allocation5 + $0x1], 0 }
   0xc   :  { %27 = vsyncpa [#allocation8], 0 }
   0xd   :  { %29 = vsyncpa [#allocation8 + $0x1], 0  ;;  %s2798_s18 = smov 0   ;;  %s2800_s19 = smov 0  }
   0xe   :  { %s2802_s20 = smov 0   ;;  %s2804_s21 = smov 0  }
   0xf LB: > { %3620 = sst [smem:[#allocation13_spill]] %s2690_s18  ;;  %s2819_s22 = sadd.s32 4294967295, %s2702_s21   ;;  %s2702_s21 = sphi %s2804_s21, %s3649_s21   ;;  %s2698_s20 = sphi %s2802_s20, %s3652_s20   ;;  %s2694_s19 = sphi %s2800_s19, %s3651_s19   ;;  %s2690_s18 = sphi %s2798_s18, %s3650_s18  }
  0x10   : > { %3621 = sst [smem:[#allocation14_spill]] %s2694_s19  ;;  %s3593_s23 = sadd.s32 4294967294, %s2702_s21  }
  0x11   : > { %3622 = sst [smem:[#allocation15_spill]] %s2698_s20  ;;  %s2823_s24 = sadd.s32 1, %s2702_s21  }
  0x12   : > { %3623 = sst [smem:[#allocation16_spill]] %s2702_s21  ;;  %s278_s25 = sadd.s32 1, %s2698_s20 }
  0x13   : > { %3624 = sst [smem:[#allocation17_spill]] %s2823_s24  ;;  %s275_s26 = ssub.s32 %s2702_s21, %s2823_s24 }
  0x14   : > { %p288_p0 = scmp.ne.s32.totalorder %s2698_s20, %s2694_s19  ;;  %p276_p1 = scmp.eq.s32.totalorder %s275_s26, 0 }
  0x15   : > { %p289_p2 = scmp.eq.s32.totalorder %s2819_s22, 1  ;;  %p294_p3 = scmp.ne.s32.totalorder %s2694_s19, %s2690_s18 }
  0x16   : > { %p295_p4 = scmp.eq.s32.totalorder %s3593_s23, 1  ;;  %p1914_p7 = scmp.ge.s32.totalorder %s2702_s21, 1 }
  0x17   : > { %s2836_s27 = scalar_select %p276_p1, %s2698_s20, %s278_s25  }
  0x18   : > { %p2838_p5 = por %p289_p2, %p288_p0  ;;  %p2842_p6 = por %p295_p4, %p294_p3 }
  0x19   : > { %3625 = sst [smem:[#allocation18_spill]] %s2836_s27  ;;  %p454_p8 = scmp.lt.s32.totalorder %s2702_s21, 3 }
  0x1a   : > { %s3627_s29 = scalar_select %p2842_p6, 1, 0 }
  0x1b   : > { %p455_p9 = pnand %p1914_p7, %p454_p8 }
  0x1c   : > { %3628 = sst [smem:[#allocation19_spill]] %s3627_s29  ;;  %p521_p10 = scmp.lt.s32.totalorder (!%p455_p9), %s2819_s22, 1 }
  0x1d   : > { %458 = sbr.rel (%p455_p9) target bundleno = 2503 (0x9c7), region = 64  ;;  %s3629_s0 = sld [smem:[#allocation20_spill]] (!%p455_p9) }
  0x1e   : > { %s3603_s23 = smov (!%p455_p9), 2   ;;  %s3595_s27 = smov (!%p455_p9), 126  }
  0x1f   : > { %s3597_s20 = smov (!%p455_p9), 124   ;;  %s3630_s1 = sld [smem:[#allocation21_spill]] (!%p455_p9) }
  0x20   : > { %s3601_s25 = smov (!%p455_p9), 127   ;;  %s3631_s6 = sld [smem:[#allocation24_spill]] (!%p455_p9) }
  0x21   : > { %s3636_s17 = smov (!%p455_p9), 126   ;;  %s3639_s7 = sld [smem:[#allocation25_spill]] (!%p455_p9) }
  0x22   : > { %s522_s30 = scalar_select %p521_p10, %s2819_s22, 1  ;;  %vm534_vm0 = vcmask 15360   ;;  %vm608_vm1 = vcmask 326656   ;;  %v2709_v6 = vmov 0   ;;  %vm564_vm2 = vcmask 1014784  }
  0x23   : > { %2114 = vset.pattern.permute.xlu1 %v2709_v6  ;;  %2115 = vset.pattern.permute.xlu0 %v2709_v6  ;;  %vm615_vm3 = vcmask 1043456   ;;  %vm543_vm4 = vcmask 1039360   ;;  %vm550_vm5 = vcmask 1031168   ;;  %vm557_vm6 = vcmask 1022976   ;;  %vm2881_vm7 = vmneg %vm534_vm0  ;;  %s3640_s2 = sld [smem:[#allocation22_spill]]  ;;  %s2711_s21 = smov [#allocation4]  }
  0x24   : > { %s1920_s16 = sshll.u32 %s522_s30, 3  ;;  %873 = vmatprep.subr.bf16.mxu1 %v2709_v6  ;;  %vm2710_vm8 = vmmov 1   ;;  %v526_v44 = vlaneseq  ;;  %s3635_s30 = smov 125   ;;  %vm866_vm11 = vcmask 261120   ;;  %vm3001_vm12 = vmpackc.low %vm2881_vm7, %vm2881_vm7 }
  0x25   : > { %s524_s26 = scalar_lea.vmem %s3629_s0, %s1920_s16  ;;  %v2476_v5 = vld [vmem:[%s3630_s1] sm:$0xff]   ;;  %s3599_s16 = smov 125   ;;  %vm1924_vm9 = vmpackc.low %vm2710_vm8, %vm2881_vm7  ;;  %v2477_v32 = vld [vmem:[%s3630_s1 + $0x8] sm:$0xff]  }
  0x26   : > { %v529_v0 = vld [vmem:[%s524_s26] sm:$0xff]  ;;  %2021 = vmatprep.mubr.msk.bf16.mxu0 %vm608_vm1, %v2476_v5  ;;  %v576_v7 = vld [vmem:[%s3631_s6 + $0x10] sm:$0xff]  ;;  %v577_v8 = vld [vmem:[%s3631_s6 + $0x18] sm:$0xff]  ;;  %v2898_v46 = vand.u32 127, %v526_v44  ;;  %s3634_s26 = smov 2   ;;  %s3643_s3 = sld [smem:[#allocation23_spill]] }
  0x27   : > { %531 = vrot.lane.b32.xlu0 %v529_v0, %s3603_s23  ;;  %v574_v9 = vld [vmem:[%s3631_s6] sm:$0xff]  ;;  %v575_v10 = vld [vmem:[%s3631_s6 + $0x8] sm:$0xff]  ;;  %s3638_s23 = smov 124   ;;  %s1637_s6 = sand.u32 1, %s2819_s22  }
  0x28   : > { %vm528_vm10 = vcmp.lt.s32.totalorder %v2898_v46, 16 }
  0x99   : > { %v532_v1 = vpop.permute.xlu0 %531 }
  0x9a   : > { %v535_v2 = vsel %vm534_vm0, 0.0, %v532_v1  ;;  %v536_v3 = vsel %vm534_vm0, %v532_v1, 0.0 }
  0x9b   : > { %v2099_v4 = vpack.i.bf16 %v536_v3, %v535_v2 }
  0x9d   : > { %2100 = vrot.lane.b32.xlu1 %v2099_v4, %s3595_s27  ;;  %2095 = vrot.lane.b32.xlu0 %v2099_v4, %s3597_s20  ;;  %s2896_s27 = sand.u32 1, %s2694_s19   ;;  %s3637_s20 = smov 127  }
  0xa1   : > { %2105 = vrot.lane.b32.xlu1 %v2099_v4, %s3599_s16  ;;  %2110 = vrot.lane.b32.xlu0 %v2099_v4, %s3601_s25  ;;  %s2901_s16 = sshll.u32 %s2896_s27, 5 }
  0xa2   : > { %s2907_s25 = scalar_lea.vmem [#allocation2], %s2901_s16  ;;  %s3037_s24 = scalar_lea.vmem [#allocation4], %s2901_s16 }
  0xa3   : > { %s3160_s15 = scalar_lea.vmem [#allocation6], %s2901_s16  ;;  %s3282_s29 = scalar_lea.vmem [#allocation7], %s2901_s16 }
  0xa4   : > { %s1698_s0 = sshll.u32 %s3160_s15, 4  ;;  %s1714_s1 = sshll.u32 %s3282_s29, 4  ;;  %s3396_s0 = int_to_ptr.vmem [resolvable:$true] %s1698_s0  ;;  %s3398_s1 = int_to_ptr.vmem [resolvable:$true] %s1714_s1 }
  0xa5   : > { %590 = vperm.xlu1 %2114, %v576_v7   ;;  %595 = vperm.xlu0 %2115, %v577_v8  }
  0xa9   : > { %580 = vperm.xlu1 %2114, %v574_v9  }
  0xad   : > { %585 = vperm.xlu1 %2114, %v575_v10  }
 0x10f   : > { %v2101_v11 = vpop.permute.xlu1 %2100  ;;  %v2096_v12 = vpop.permute.xlu0 %2095 }
 0x110   : > { %v2098_v13 = vunpack.i.h.bf16 %v2096_v12  ;;  %v2097_v14 = vunpack.i.l.bf16 %v2096_v12  ;;  %v2103_v15 = vunpack.i.h.bf16 %v2101_v11  ;;  %v2102_v16 = vunpack.i.l.bf16 %v2101_v11 }
 0x112   : > { %v565_v17 = vsel %vm564_vm2, %v2097_v14, %v2098_v13  ;;  %v551_v28 = vsel %vm550_vm5, %v2102_v16, %v2103_v15  ;;  %v826_v14 = vld [vmem:[%s3639_s7 + $0x10] sm:$0xff]  ;;  %v2480_v15 = vld [vmem:[%s3640_s2 + $0x4] ss:$8 sps:$4 sm:$0xff]   ;;  %v827_v16 = vld [vmem:[%s3639_s7 + $0x18] sm:$0xff] }
 0x113   : > { %v2106_v18 = vpop.permute.xlu1 %2105  ;;  %v2111_v19 = vpop.permute.xlu0 %2110  ;;  %v573_v20 = vpack.c.bf16 %v565_v17, %v565_v17  ;;  %1943 = vmatprep.mubr.msk.bf16.mxu1 %vm866_vm11, %v2480_v15  ;;  %v824_v17 = vld [vmem:[%s3639_s7] sm:$0xff] }
 0x114   : > { %v2108_v21 = vunpack.i.h.bf16 %v2106_v18  ;;  %v2107_v22 = vunpack.i.l.bf16 %v2106_v18  ;;  %v2113_v23 = vunpack.i.h.bf16 %v2111_v19  ;;  %v2112_v24 = vunpack.i.l.bf16 %v2111_v19  ;;  %v825_v18 = vld [vmem:[%s3639_s7 + $0x8] sm:$0xff] }
 0x115   : > { %2025 = vmatprep.subr.msk.bf16.mxu0 %vm615_vm3, %v573_v20  ;;  %v617_v25 = vsel %vm615_vm3, %v573_v20, 0 }
 0x116   : > { %v544_v27 = vsel %vm543_vm4, %v2112_v24, %v2113_v23  ;;  %2016 = vmatpush3.bf16.msra.mxu0 %v617_v25  ;;  %v558_v29 = vsel %vm557_vm6, %v2107_v22, %v2108_v21 }
 0x117   : > { %v572_v30 = vpack.c.bf16 %v558_v29, %v551_v28  ;;  %v1925_v31 = vpack.c.bf16 %v544_v27, %v532_v1 }
 0x119   : > { %2017 = vmatprep.subr.bf16.mxu0 %v572_v30 }
 0x11a   : > { %2018 = vmatpush3.bf16.msra.mxu0 %v572_v30 }
 0x11b   : > { %2019 = vmatprep.subr.msk.bf16.mxu0 %vm1924_vm9, %v1925_v31 }
 0x11e   : > { %2020 = vmatpush3.bf16.msk.msra.mxu0 %vm1924_vm9, %v1925_v31 }
 0x11f   : > { %1124 = vmatprep.subr.bf16.mxu0 %v2709_v6 }
 0x120   : > { %v591_v33 = vpop.permute.xlu1 %590  ;;  %v596_v38 = vpop.permute.xlu0 %595 }
 0x121   : > { %2022 = vmatmul.mubr.msk.bf16.vlgmr.msra.gmra.mxu0 %vm608_vm1, %v2477_v32 }
 0x124   : > { %v581_v34 = vpop.permute.xlu1 %580 }
 0x128   : > { %v586_v42 = vpop.permute.xlu1 %585 }
 0x1e1   : > { %v2023_v35 = vpop.f32.mrf.mxu0 }
 0x1e2   : > { %v662_v36 = vadd.f32 %v2023_v35, %v591_v33 }
 0x1e3   : > { %v653_v37 = vpop.f32.mrf.mxu0 }
 0x1e4   : > { %2498 = vtanh.f32 %v662_v36  ;;  %v654_v39 = vadd.f32 %v653_v37, %v581_v34 }
 0x1e5   : > { %v2024_v40 = vpop.f32.mrf.mxu0 }
 0x1e6   : > { %2500 = vtanh.f32 %v654_v39  ;;  %v665_v41 = vadd.f32 %v2024_v40, %v596_v38 }
 0x1e7   : > { %v656_v43 = vpop.f32.mrf.mxu0 }
 0x1e8   : > { %2502 = vtanh.f32 %v665_v41  ;;  %v657_v45 = vadd.f32 %v656_v43, %v586_v42 }
 0x1ea   : > { %2504 = vtanh.f32 %v657_v45 }
 0x1f1   : > { %v2499_v47 = vpop.eup %2498 }
 0x1f2   : > { %v676_v48 = vsel %vm528_vm10, %v2499_v47, 0.0 }
 0x1f3   : > { %v2501_v49 = vpop.eup %2500  ;;  %680 = vst [vmem:[%s2907_s25 + $0x10] sm:$0xff] %v676_v48 }
 0x1f4   : > { %v674_v50 = vsel %vm528_vm10, %v2501_v49, 0.0 }
 0x1f5   : > { %v2503_v51 = vpop.eup %2502  ;;  %678 = vst [vmem:[%s2907_s25] sm:$0xff] %v674_v50 }
 0x1f6   : > { %v677_v52 = vsel %vm528_vm10, %v2503_v51, 0.0 }
 0x1f7   : > { %v2505_v53 = vpop.eup %2504  ;;  %v2116_v54 = vpack.i.bf16 %v677_v52, %v676_v48  ;;  %681 = vst [vmem:[%s2907_s25 + $0x18] sm:$0xff] %v677_v52 }
 0x1f8   : > { %v675_v55 = vsel %vm528_vm10, %v2505_v53, 0.0 }
 0x1f9   : > { %2117 = vrot.lane.b32.xlu0 %v2116_v54, %s3634_s26  ;;  %v2121_v56 = vpack.i.bf16 %v675_v55, %v674_v50  ;;  %679 = vst [vmem:[%s2907_s25 + $0x8] sm:$0xff] %v675_v55 }
 0x1fb   : > { %2122 = vrot.lane.b32.xlu1 %v2121_v56, %s3634_s26 }
 0x26b   : > { %v2118_v57 = vpop.permute.xlu0 %2117 }
 0x26c   : > { %v2921_v58 = vunpack.i.h.bf16 %v2118_v57  ;;  %v2923_v59 = vunpack.i.l.bf16 %v2118_v57 }
 0x26d   : > { %v2123_v60 = vpop.permute.xlu1 %2122 }
 0x26e   : > { %v701_v61 = vsel %vm534_vm0, 0.0, %v2921_v58  ;;  %v705_v62 = vsel %vm534_vm0, %v2921_v58, 0.0  ;;  %v700_v63 = vsel %vm534_vm0, 0.0, %v2923_v59  ;;  %v704_v0 = vsel %vm534_vm0, %v2923_v59, 0.0 }
 0x26f   : > { %v1936_v1 = vpack.c.bf16 %v2921_v58, %v2923_v59  ;;  %v2935_v2 = vunpack.i.h.bf16 %v2123_v60  ;;  %v2937_v3 = vunpack.i.l.bf16 %v2123_v60  ;;  %v2126_v4 = vpack.i.bf16 %v704_v0, %v700_v63 }
 0x270   : > { %v2141_v5 = vpack.i.bf16 %v705_v62, %v701_v61 }
 0x271   : > { %v699_v7 = vsel %vm534_vm0, 0.0, %v2935_v2  ;;  %v703_v8 = vsel %vm534_vm0, %v2935_v2, 0.0  ;;  %v698_v9 = vsel %vm534_vm0, 0.0, %v2937_v3  ;;  %v702_v10 = vsel %vm534_vm0, %v2937_v3, 0.0  ;;  %2127 = vrot.lane.b32.xlu0 %v2126_v4, %s3635_s30 }
 0x272   : > { %v1941_v11 = vpack.c.bf16 %v2935_v2, %v2937_v3  ;;  %2142 = vrot.lane.b32.xlu1 %v2141_v5, %s3635_s30  ;;  %v2131_v12 = vpack.i.bf16 %v702_v10, %v698_v9  ;;  %v2146_v13 = vpack.i.bf16 %v703_v8, %v699_v7  ;;  %v2481_v2 = vld [vmem:[%s3640_s2 + $0x14] ss:$8 sps:$4 sm:$0xff]   ;;  %v2483_v3 = vld [vmem:[%s3640_s2 + $0x10] ss:$8 sps:$4 sm:$0xff]  }
 0x275   : > { %2132 = vrot.lane.b32.xlu0 %v2131_v12, %s3635_s30 }
 0x276   : > { %2147 = vrot.lane.b32.xlu1 %v2146_v13, %s3635_s30 }
 0x279   : > { %2137 = vrot.lane.b32.xlu0 %v2126_v4, %s3636_s17 }
 0x27a   : > { %2152 = vrot.lane.b32.xlu1 %v2141_v5, %s3636_s17 }
 0x27d   : > { %2157 = vrot.lane.b32.xlu0 %v2131_v12, %s3636_s17 }
 0x27e   : > { %2167 = vrot.lane.b32.xlu1 %v2146_v13, %s3636_s17 }
 0x281   : > { %2162 = vrot.lane.b32.xlu0 %v2126_v4, %s3637_s20 }
 0x282   : > { %2172 = vrot.lane.b32.xlu1 %v2141_v5, %s3637_s20 }
 0x285   : > { %2177 = vrot.lane.b32.xlu0 %v2131_v12, %s3637_s20 }
 0x286   : > { %2182 = vrot.lane.b32.xlu1 %v2146_v13, %s3637_s20 }
 0x289   : > { %2187 = vrot.lane.b32.xlu0 %v2126_v4, %s3638_s23 }
 0x28a   : > { %2192 = vrot.lane.b32.xlu1 %v2141_v5, %s3638_s23 }
 0x28d   : > { %2197 = vrot.lane.b32.xlu0 %v2131_v12, %s3638_s23 }
 0x28e   : > { %2202 = vrot.lane.b32.xlu1 %v2146_v13, %s3638_s23 }
 0x291   : > { %840 = vperm.xlu0 %2115, %v826_v14  }
 0x292   : > { %845 = vperm.xlu1 %2114, %v827_v16  }
 0x295   : > { %830 = vperm.xlu0 %2115, %v824_v17  }
 0x296   : > { %835 = vperm.xlu1 %2114, %v825_v18  }
 0x2e3   : > { %v2128_v19 = vpop.permute.xlu0 %2127 }
 0x2e4   : > { %v2130_v20 = vunpack.i.h.bf16 %v2128_v19  ;;  %v2129_v21 = vunpack.i.l.bf16 %v2128_v19  ;;  %v2143_v22 = vpop.permute.xlu1 %2142 }
 0x2e5   : > { %v2145_v23 = vunpack.i.h.bf16 %v2143_v22  ;;  %v2144_v24 = vunpack.i.l.bf16 %v2143_v22 }
 0x2e6   : > { %v780_v25 = vsel %vm557_vm6, %v2129_v21, %v2130_v20 }
 0x2e7   : > { %v2133_v27 = vpop.permute.xlu0 %2132  ;;  %v781_v28 = vsel %vm557_vm6, %v2144_v24, %v2145_v23 }
 0x2e8   : > { %v2148_v29 = vpop.permute.xlu1 %2147  ;;  %v2135_v30 = vunpack.i.h.bf16 %v2133_v27  ;;  %v2134_v31 = vunpack.i.l.bf16 %v2133_v27  ;;  %v821_v32 = vpack.c.bf16 %v781_v28, %v780_v25 }
 0x2e9   : > { %v2150_v33 = vunpack.i.h.bf16 %v2148_v29  ;;  %v2149_v34 = vunpack.i.l.bf16 %v2148_v29 }
 0x2ea   : > { %874 = vmatpush1.bf16.msra.mxu1 %v821_v32  ;;  %v778_v35 = vsel %vm557_vm6, %v2134_v31, %v2135_v30 }
 0x2eb   : > { %v2138_v36 = vpop.permute.xlu0 %2137  ;;  %875 = vmatprep.subr.bf16.mxu1 %v2709_v6  ;;  %v779_v37 = vsel %vm557_vm6, %v2149_v34, %v2150_v33  ;;  %v2478_v34 = vld [vmem:[%s3640_s2] ss:$8 sps:$4 sm:$0xff]   ;;  %s2534_s2 = sshll.u32 %s2711_s21, 4  ;;  %s2535_s2 = int_to_ptr.vmem [resolvable:$false] %s2534_s2 }
 0x2ec   : > { %v2153_v38 = vpop.permute.xlu1 %2152  ;;  %v2140_v39 = vunpack.i.h.bf16 %v2138_v36  ;;  %v2139_v40 = vunpack.i.l.bf16 %v2138_v36  ;;  %v820_v41 = vpack.c.bf16 %v779_v37, %v778_v35  ;;  %s2536_s7 = scalar_lea.vmem %s2535_s2, 1024 }
 0x2ed   : > { %v2155_v42 = vunpack.i.h.bf16 %v2153_v38  ;;  %v2154_v43 = vunpack.i.l.bf16 %v2153_v38 }
 0x2ee   : > { %876 = vmatpush1.bf16.msra.mxu1 %v820_v41  ;;  %v756_v44 = vsel %vm550_vm5, %v2139_v40, %v2140_v39 }
 0x2ef   : > { %v2158_v45 = vpop.permute.xlu0 %2157  ;;  %877 = vmatprep.subr.bf16.mxu1 %v2709_v6  ;;  %v757_v47 = vsel %vm550_vm5, %v2154_v43, %v2155_v42 }
 0x2f0   : > { %v2168_v48 = vpop.permute.xlu1 %2167  ;;  %v2160_v49 = vunpack.i.h.bf16 %v2158_v45  ;;  %v2159_v50 = vunpack.i.l.bf16 %v2158_v45  ;;  %v819_v51 = vpack.c.bf16 %v757_v47, %v756_v44 }
 0x2f1   : > { %v2170_v52 = vunpack.i.h.bf16 %v2168_v48  ;;  %v2169_v53 = vunpack.i.l.bf16 %v2168_v48 }
 0x2f2   : > { %878 = vmatpush1.bf16.msra.mxu1 %v819_v51  ;;  %v754_v54 = vsel %vm550_vm5, %v2159_v50, %v2160_v49 }
 0x2f3   : > { %v2163_v55 = vpop.permute.xlu0 %2162  ;;  %879 = vmatprep.subr.bf16.mxu1 %v2709_v6  ;;  %v755_v56 = vsel %vm550_vm5, %v2169_v53, %v2170_v52 }
 0x2f4   : > { %v2173_v57 = vpop.permute.xlu1 %2172  ;;  %v2165_v60 = vunpack.i.h.bf16 %v2163_v55  ;;  %v2164_v61 = vunpack.i.l.bf16 %v2163_v55  ;;  %v818_v62 = vpack.c.bf16 %v755_v56, %v754_v54 }
 0x2f5   : > { %v2175_v63 = vunpack.i.h.bf16 %v2173_v57  ;;  %v2174_v0 = vunpack.i.l.bf16 %v2173_v57 }
 0x2f6   : > { %880 = vmatpush1.bf16.msra.mxu1 %v818_v62  ;;  %v732_v4 = vsel %vm543_vm4, %v2164_v61, %v2165_v60 }
 0x2f7   : > { %v2178_v5 = vpop.permute.xlu0 %2177  ;;  %881 = vmatprep.subr.bf16.mxu1 %v2709_v6  ;;  %v733_v7 = vsel %vm543_vm4, %v2174_v0, %v2175_v63 }
 0x2f8   : > { %v2183_v8 = vpop.permute.xlu1 %2182  ;;  %v2180_v9 = vunpack.i.h.bf16 %v2178_v5  ;;  %v2179_v10 = vunpack.i.l.bf16 %v2178_v5  ;;  %v817_v12 = vpack.c.bf16 %v733_v7, %v732_v4 }
 0x2f9   : > { %v2185_v13 = vunpack.i.h.bf16 %v2183_v8  ;;  %v2184_v14 = vunpack.i.l.bf16 %v2183_v8 }
 0x2fa   : > { %882 = vmatpush1.bf16.msra.mxu1 %v817_v12  ;;  %v730_v15 = vsel %vm543_vm4, %v2179_v10, %v2180_v9 }
 0x2fb   : > { %883 = vmatprep.subr.bf16.mxu1 %v2709_v6  ;;  %v731_v16 = vsel %vm543_vm4, %v2184_v14, %v2185_v13  ;;  %v2188_v18 = vpop.permute.xlu0 %2187 }
 0x2fc   : > { %v2193_v17 = vpop.permute.xlu1 %2192  ;;  %v816_v19 = vpack.c.bf16 %v731_v16, %v730_v15  ;;  %v2190_v23 = vunpack.i.h.bf16 %v2188_v18  ;;  %v2189_v24 = vunpack.i.l.bf16 %v2188_v18 }
 0x2fd   : > { %v2195_v21 = vunpack.i.h.bf16 %v2193_v17  ;;  %v2194_v22 = vunpack.i.l.bf16 %v2193_v17 }
 0x2fe   : > { %884 = vmatpush1.bf16.msra.mxu1 %v816_v19  ;;  %v804_v26 = vsel %vm564_vm2, %v2189_v24, %v2190_v23 }
 0x2ff   : > { %885 = vmatprep.subr.bf16.mxu1 %v2709_v6  ;;  %v2198_v27 = vpop.permute.xlu0 %2197  ;;  %v805_v28 = vsel %vm564_vm2, %v2194_v22, %v2195_v21 }
 0x300   : > { %v2203_v25 = vpop.permute.xlu1 %2202  ;;  %v2200_v31 = vunpack.i.h.bf16 %v2198_v27  ;;  %v2199_v32 = vunpack.i.l.bf16 %v2198_v27  ;;  %v823_v58 = vpack.c.bf16 %v805_v28, %v804_v26  ;;  %v1079_v27 = vld [vmem:[%s3585_s8 + $0x18] sm:$0xff]  ;;  %v1078_v26 = vld [vmem:[%s3585_s8 + $0x10] sm:$0xff]  ;;  %v1077_v28 = vld [vmem:[%s3585_s8 + $0x8] sm:$0xff] }
 0x301   : > { %v2205_v29 = vunpack.i.h.bf16 %v2203_v25  ;;  %v2204_v30 = vunpack.i.l.bf16 %v2203_v25  ;;  %v2484_v25 = vld [vmem:[%s3643_s3 + $0x4] ss:$8 sps:$4 sm:$0xff]  }
 0x302   : > { %1937 = vmatpush1.bf16.msk.msra.mxu1 %vm3001_vm12, %v1936_v1  ;;  %v802_v59 = vsel %vm564_vm2, %v2199_v32, %v2200_v31  ;;  %1959 = vmatprep.mubr.msk.bf16.mxu0 %vm866_vm11, %v2484_v25 }
 0x303   : > { %887 = vmatprep.subr.bf16.mxu1 %v2709_v6  ;;  %v803_v1 = vsel %vm564_vm2, %v2204_v30, %v2205_v29  ;;  %v1076_v29 = vld [vmem:[%s3585_s8] sm:$0xff] }
 0x304   : > { %v822_v33 = vpack.c.bf16 %v803_v1, %v802_v59 }
 0x306   : > { %1942 = vmatpush1.bf16.msk.msra.mxu1 %vm3001_vm12, %v1941_v11 }
 0x307   : > { %901 = vmatprep.subr.bf16.mxu1 %v2709_v6 }
 0x30a   : > { %902 = vmatpush2.bf16.msra.mxu1 %v823_v58 }
 0x30b   : > { %903 = vmatprep.subr.bf16.mxu1 %v2709_v6 }
 0x30c   : > { %v841_v11 = vpop.permute.xlu0 %840 }
 0x30d   : > { %v846_v35 = vpop.permute.xlu1 %845 }
 0x30e   : > { %904 = vmatpush2.bf16.msra.mxu1 %v822_v33 }
 0x30f   : > { %1375 = vmatprep.subr.bf16.mxu1 %v2709_v6 }
 0x310   : > { %v831_v36 = vpop.permute.xlu0 %830 }
 0x311   : > { %906 = vmatmul.mubr.bf16.vlgmr.msra.gmra.mxu1 %v2478_v34  ;;  %v836_v40 = vpop.permute.xlu1 %835 }
 0x312   : > { %1944 = vmatprep.mubr.msk.bf16.mxu1 %vm866_vm11, %v2481_v2 }
 0x319   : > { %914 = vmatmul.mubr.bf16.gmra.mxu1 %v2483_v3 }
 0x3d1   : > { %v907_v37 = vpop.f32.mrf.mxu1 }
 0x3d2   : > { %v908_v38 = vadd.f32 %v907_v37, %v831_v36 }
 0x3d3   : > { %v909_v39 = vpop.f32.mrf.mxu1 }
 0x3d4   : > { %2506 = vtanh.f32 %v908_v38 }
 0x3d5   : > { %v910_v41 = vpop.f32.mrf.mxu1 }
 0x3d6   : > { %v911_v42 = vadd.f32 %v910_v41, %v836_v40 }
 0x3d7   : > { %v912_v43 = vpop.f32.mrf.mxu1 }
 0x3d8   : > { %2508 = vtanh.f32 %v911_v42 }
 0x3d9   : > { %v915_v44 = vpop.f32.mrf.mxu1 }
 0x3da   : > { %v916_v45 = vadd.f32 %v915_v44, %v841_v11 }
 0x3db   : > { %v917_v47 = vpop.f32.mrf.mxu1 }
 0x3dc   : > { %2510 = vtanh.f32 %v916_v45 }
 0x3dd   : > { %v918_v48 = vpop.f32.mrf.mxu1 }
 0x3de   : > { %v919_v49 = vadd.f32 %v918_v48, %v846_v35 }
 0x3df   : > { %v920_v50 = vpop.f32.mrf.mxu1 }
 0x3e0   : > { %2512 = vtanh.f32 %v919_v49 }
 0x3e1   : > { %v2507_v51 = vpop.eup %2506 }
 0x3e2   : > { %v926_v52 = vsel %vm528_vm10, %v2507_v51, 0.0 }
 0x3e3   : > { %930 = vst [vmem:[%s3037_s24] sm:$0xff] %v926_v52 }
 0x3e5   : > { %v2509_v53 = vpop.eup %2508 }
 0x3e6   : > { %v927_v54 = vsel %vm528_vm10, %v2509_v53, 0.0 }
 0x3e7   : > { %v2211_v55 = vpack.i.bf16 %v927_v54, %v926_v52  ;;  %931 = vst [vmem:[%s3037_s24 + $0x8] sm:$0xff] %v927_v54 }
 0x3e9   : > { %v2511_v56 = vpop.eup %2510  ;;  %2212 = vrot.lane.b32.xlu1 %v2211_v55, %s3634_s26 }
 0x3ea   : > { %v928_v57 = vsel %vm528_vm10, %v2511_v56, 0.0 }
 0x3eb   : > { %932 = vst [vmem:[%s3037_s24 + $0x10] sm:$0xff] %v928_v57 }
 0x3ed   : > { %v2513_v60 = vpop.eup %2512 }
 0x3ee   : > { %v929_v61 = vsel %vm528_vm10, %v2513_v60, 0.0 }
 0x3ef   : > { %v2206_v62 = vpack.i.bf16 %v929_v61, %v928_v57  ;;  %933 = vst [vmem:[%s3037_s24 + $0x18] sm:$0xff] %v929_v61 }
 0x3f1   : > { %2207 = vrot.lane.b32.xlu0 %v2206_v62, %s3634_s26 }
 0x45b   : > { %v2213_v63 = vpop.permute.xlu1 %2212 }
 0x45c   : > { %v3051_v0 = vunpack.i.h.bf16 %v2213_v63  ;;  %v3053_v4 = vunpack.i.l.bf16 %v2213_v63 }
 0x45e   : > { %v1957_v5 = vpack.c.bf16 %v3051_v0, %v3053_v4  ;;  %v951_v18 = vsel %vm534_vm0, 0.0, %v3051_v0  ;;  %v955_v19 = vsel %vm534_vm0, %v3051_v0, 0.0  ;;  %v950_v21 = vsel %vm534_vm0, 0.0, %v3053_v4  ;;  %v2487_v0 = vld [vmem:[%s3643_s3 + $0x14] ss:$8 sps:$4 sm:$0xff]  }
 0x45f   : > { %v954_v22 = vsel %vm534_vm0, %v3053_v4, 0.0  ;;  %v2231_v23 = vpack.i.bf16 %v955_v19, %v951_v18  ;;  %v2489_v4 = vld [vmem:[%s3643_s3 + $0x10] ss:$8 sps:$4 sm:$0xff]  }
 0x460   : > { %v2221_v24 = vpack.i.bf16 %v954_v22, %v950_v21 }
 0x463   : > { %v2208_v7 = vpop.permute.xlu0 %2207 }
 0x464   : > { %v3057_v8 = vunpack.i.h.bf16 %v2208_v7  ;;  %v3059_v9 = vunpack.i.l.bf16 %v2208_v7 }
 0x466   : > { %v953_v10 = vsel %vm534_vm0, 0.0, %v3057_v8  ;;  %v957_v12 = vsel %vm534_vm0, %v3057_v8, 0.0  ;;  %v952_v13 = vsel %vm534_vm0, 0.0, %v3059_v9  ;;  %v956_v14 = vsel %vm534_vm0, %v3059_v9, 0.0 }
 0x467   : > { %v1952_v15 = vpack.c.bf16 %v3057_v8, %v3059_v9  ;;  %v2216_v16 = vpack.i.bf16 %v956_v14, %v952_v13  ;;  %v2226_v17 = vpack.i.bf16 %v957_v12, %v953_v10 }
 0x469   : > { %2217 = vrot.lane.b32.xlu0 %v2216_v16, %s3635_s30  ;;  %2227 = vrot.lane.b32.xlu1 %v2226_v17, %s3635_s30 }
 0x46d   : > { %2232 = vrot.lane.b32.xlu1 %v2231_v23, %s3635_s30  ;;  %2222 = vrot.lane.b32.xlu0 %v2221_v24, %s3635_s30 }
 0x471   : > { %2247 = vrot.lane.b32.xlu1 %v2226_v17, %s3636_s17  ;;  %2237 = vrot.lane.b32.xlu0 %v2216_v16, %s3636_s17 }
 0x475   : > { %2252 = vrot.lane.b32.xlu1 %v2231_v23, %s3636_s17  ;;  %2242 = vrot.lane.b32.xlu0 %v2221_v24, %s3636_s17 }
 0x479   : > { %2267 = vrot.lane.b32.xlu1 %v2226_v17, %s3637_s20  ;;  %2257 = vrot.lane.b32.xlu0 %v2216_v16, %s3637_s20 }
 0x47d   : > { %2272 = vrot.lane.b32.xlu1 %v2231_v23, %s3637_s20  ;;  %2262 = vrot.lane.b32.xlu0 %v2221_v24, %s3637_s20 }
 0x481   : > { %2287 = vrot.lane.b32.xlu1 %v2226_v17, %s3638_s23  ;;  %2277 = vrot.lane.b32.xlu0 %v2216_v16, %s3638_s23 }
 0x485   : > { %2292 = vrot.lane.b32.xlu1 %v2231_v23, %s3638_s23  ;;  %2282 = vrot.lane.b32.xlu0 %v2221_v24, %s3638_s23 }
 0x489   : > { %1097 = vperm.xlu1 %2114, %v1079_v27   ;;  %1092 = vperm.xlu0 %2115, %v1078_v26  }
 0x48d   : > { %1087 = vperm.xlu1 %2114, %v1077_v28   ;;  %1082 = vperm.xlu0 %2115, %v1076_v29  }
 0x4db   : > { %v2218_v30 = vpop.permute.xlu0 %2217  ;;  %v2228_v31 = vpop.permute.xlu1 %2227 }
 0x4dc   : > { %v2220_v32 = vunpack.i.h.bf16 %v2218_v30  ;;  %v2219_v58 = vunpack.i.l.bf16 %v2218_v30  ;;  %v2230_v59 = vunpack.i.h.bf16 %v2228_v31  ;;  %v2229_v1 = vunpack.i.l.bf16 %v2228_v31 }
 0x4de   : > { %v1032_v33 = vsel %vm557_vm6, %v2219_v58, %v2220_v32  ;;  %v1033_v34 = vsel %vm557_vm6, %v2229_v1, %v2230_v59 }
 0x4df   : > { %v1073_v2 = vpack.c.bf16 %v1033_v34, %v1032_v33  ;;  %v2233_v3 = vpop.permute.xlu1 %2232  ;;  %v2223_v11 = vpop.permute.xlu0 %2222 }
 0x4e0   : > { %v2235_v35 = vunpack.i.h.bf16 %v2233_v3  ;;  %v2234_v36 = vunpack.i.l.bf16 %v2233_v3  ;;  %v2225_v37 = vunpack.i.h.bf16 %v2223_v11  ;;  %v2224_v38 = vunpack.i.l.bf16 %v2223_v11 }
 0x4e1   : > { %1125 = vmatpush1.bf16.msra.mxu0 %v1073_v2 }
 0x4e2   : > { %v1031_v39 = vsel %vm557_vm6, %v2234_v36, %v2235_v35  ;;  %v1030_v40 = vsel %vm557_vm6, %v2224_v38, %v2225_v37  ;;  %1126 = vmatprep.subr.bf16.mxu0 %v2709_v6  ;;  %v2486_v38 = vld [vmem:[%s3643_s3] ss:$8 sps:$4 sm:$0xff]   ;;  %s3402_s3 = sshll.u32 %s2819_s22, 9 }
 0x4e3   : > { %v1072_v41 = vpack.c.bf16 %v1031_v39, %v1030_v40  ;;  %v2248_v42 = vpop.permute.xlu1 %2247  ;;  %v2238_v43 = vpop.permute.xlu0 %2237 }
 0x4e4   : > { %v2250_v44 = vunpack.i.h.bf16 %v2248_v42  ;;  %v2249_v45 = vunpack.i.l.bf16 %v2248_v42  ;;  %v2240_v47 = vunpack.i.h.bf16 %v2238_v43  ;;  %v2239_v48 = vunpack.i.l.bf16 %v2238_v43 }
 0x4e5   : > { %1127 = vmatpush1.bf16.msra.mxu0 %v1072_v41 }
 0x4e6   : > { %v1009_v49 = vsel %vm550_vm5, %v2249_v45, %v2250_v44  ;;  %v1008_v50 = vsel %vm550_vm5, %v2239_v48, %v2240_v47  ;;  %1128 = vmatprep.subr.bf16.mxu0 %v2709_v6 }
 0x4e7   : > { %v1071_v51 = vpack.c.bf16 %v1009_v49, %v1008_v50  ;;  %v2253_v52 = vpop.permute.xlu1 %2252  ;;  %v2243_v53 = vpop.permute.xlu0 %2242 }
 0x4e8   : > { %v2255_v54 = vunpack.i.h.bf16 %v2253_v52  ;;  %v2254_v55 = vunpack.i.l.bf16 %v2253_v52  ;;  %v2245_v56 = vunpack.i.h.bf16 %v2243_v53  ;;  %v2244_v57 = vunpack.i.l.bf16 %v2243_v53 }
 0x4e9   : > { %1129 = vmatpush1.bf16.msra.mxu0 %v1071_v51 }
 0x4ea   : > { %v1007_v60 = vsel %vm550_vm5, %v2254_v55, %v2255_v54  ;;  %v1006_v61 = vsel %vm550_vm5, %v2244_v57, %v2245_v56  ;;  %1130 = vmatprep.subr.bf16.mxu0 %v2709_v6 }
 0x4eb   : > { %v1070_v62 = vpack.c.bf16 %v1007_v60, %v1006_v61  ;;  %v2268_v63 = vpop.permute.xlu1 %2267  ;;  %v2258_v7 = vpop.permute.xlu0 %2257 }
 0x4ec   : > { %v2270_v10 = vunpack.i.h.bf16 %v2268_v63  ;;  %v2269_v12 = vunpack.i.l.bf16 %v2268_v63  ;;  %v2260_v13 = vunpack.i.h.bf16 %v2258_v7  ;;  %v2259_v14 = vunpack.i.l.bf16 %v2258_v7 }
 0x4ed   : > { %1131 = vmatpush1.bf16.msra.mxu0 %v1070_v62 }
 0x4ee   : > { %v985_v16 = vsel %vm543_vm4, %v2269_v12, %v2270_v10  ;;  %v984_v17 = vsel %vm543_vm4, %v2259_v14, %v2260_v13  ;;  %1132 = vmatprep.subr.bf16.mxu0 %v2709_v6 }
 0x4ef   : > { %v1069_v18 = vpack.c.bf16 %v985_v16, %v984_v17  ;;  %v2273_v19 = vpop.permute.xlu1 %2272  ;;  %v2263_v21 = vpop.permute.xlu0 %2262 }
 0x4f0   : > { %v2275_v22 = vunpack.i.h.bf16 %v2273_v19  ;;  %v2274_v23 = vunpack.i.l.bf16 %v2273_v19  ;;  %v2265_v24 = vunpack.i.h.bf16 %v2263_v21  ;;  %v2264_v25 = vunpack.i.l.bf16 %v2263_v21 }
 0x4f1   : > { %1133 = vmatpush1.bf16.msra.mxu0 %v1069_v18 }
 0x4f2   : > { %v983_v27 = vsel %vm543_vm4, %v2274_v23, %v2275_v22  ;;  %v982_v26 = vsel %vm543_vm4, %v2264_v25, %v2265_v24  ;;  %1134 = vmatprep.subr.bf16.mxu0 %v2709_v6 }
 0x4f3   : > { %v1068_v28 = vpack.c.bf16 %v983_v27, %v982_v26  ;;  %v2288_v29 = vpop.permute.xlu1 %2287  ;;  %v2278_v30 = vpop.permute.xlu0 %2277 }
 0x4f4   : > { %v2290_v31 = vunpack.i.h.bf16 %v2288_v29  ;;  %v2289_v32 = vunpack.i.l.bf16 %v2288_v29  ;;  %v2280_v58 = vunpack.i.h.bf16 %v2278_v30  ;;  %v2279_v59 = vunpack.i.l.bf16 %v2278_v30 }
 0x4f5   : > { %1135 = vmatpush1.bf16.msra.mxu0 %v1068_v28 }
 0x4f6   : > { %1136 = vmatprep.subr.bf16.mxu0 %v2709_v6  ;;  %v1057_v34 = vsel %vm564_vm2, %v2289_v32, %v2290_v31  ;;  %v1056_v2 = vsel %vm564_vm2, %v2279_v59, %v2280_v58 }
 0x4f7   : > { %v2293_v1 = vpop.permute.xlu1 %2292  ;;  %v2283_v33 = vpop.permute.xlu0 %2282  ;;  %v1075_v8 = vpack.c.bf16 %v1057_v34, %v1056_v2  ;;  %v1329_v34 = vld [vmem:[%s3586_s9 + $0x10] sm:$0xff]  ;;  %v1328_v2 = vld [vmem:[%s3586_s9 + $0x8] sm:$0xff] }
 0x4f8   : > { %v2295_v3 = vunpack.i.h.bf16 %v2293_v1  ;;  %v2294_v11 = vunpack.i.l.bf16 %v2293_v1  ;;  %v2285_v35 = vunpack.i.h.bf16 %v2283_v33  ;;  %v2284_v36 = vunpack.i.l.bf16 %v2283_v33  ;;  %v2492_v1 = vld [vmem:[%s3581_s4 + $0x4] ss:$8 sps:$4 sm:$0xff]   ;;  %v1330_v33 = vld [vmem:[%s3586_s9 + $0x18] sm:$0xff] }
 0x4f9   : > { %1953 = vmatpush1.bf16.msk.msra.mxu0 %vm3001_vm12, %v1952_v15  ;;  %1975 = vmatprep.mubr.msk.bf16.mxu1 %vm866_vm11, %v2492_v1 }
 0x4fa   : > { %1138 = vmatprep.subr.bf16.mxu0 %v2709_v6  ;;  %v1055_v9 = vsel %vm564_vm2, %v2294_v11, %v2295_v3  ;;  %v1054_v15 = vsel %vm564_vm2, %v2284_v36, %v2285_v35  ;;  %v1327_v3 = vld [vmem:[%s3586_s9] sm:$0xff] }
 0x4fb   : > { %v1074_v37 = vpack.c.bf16 %v1055_v9, %v1054_v15 }
 0x4fd   : > { %1958 = vmatpush1.bf16.msk.msra.mxu0 %vm3001_vm12, %v1957_v5 }
 0x4fe   : > { %1152 = vmatprep.subr.bf16.mxu0 %v2709_v6 }
 0x501   : > { %1153 = vmatpush2.bf16.msra.mxu0 %v1075_v8 }
 0x502   : > { %1154 = vmatprep.subr.bf16.mxu0 %v2709_v6 }
 0x504   : > { %v1093_v5 = vpop.permute.xlu0 %1092  ;;  %v1098_v39 = vpop.permute.xlu1 %1097 }
 0x505   : > { %1155 = vmatpush2.bf16.msra.mxu0 %v1074_v37 }
 0x506   : > { %1590 = vmatprep.subr.bf16.mxu0 %v2709_v6 }
 0x508   : > { %1157 = vmatmul.mubr.bf16.vlgmr.msra.gmra.mxu0 %v2486_v38  ;;  %v1083_v40 = vpop.permute.xlu0 %1082  ;;  %v1088_v44 = vpop.permute.xlu1 %1087 }
 0x509   : > { %1960 = vmatprep.mubr.msk.bf16.mxu0 %vm866_vm11, %v2487_v0 }
 0x510   : > { %1165 = vmatmul.mubr.bf16.gmra.mxu0 %v2489_v4 }
 0x5c8   : > { %v1158_v41 = vpop.f32.mrf.mxu0 }
 0x5c9   : > { %v1159_v42 = vadd.f32 %v1158_v41, %v1083_v40 }
 0x5ca   : > { %v1160_v43 = vpop.f32.mrf.mxu0 }
 0x5cb   : > { %2514 = vtanh.f32 %v1159_v42 }
 0x5cc   : > { %v1161_v45 = vpop.f32.mrf.mxu0 }
 0x5cd   : > { %v1162_v47 = vadd.f32 %v1161_v45, %v1088_v44 }
 0x5ce   : > { %v1163_v48 = vpop.f32.mrf.mxu0 }
 0x5cf   : > { %2516 = vtanh.f32 %v1162_v47 }
 0x5d0   : > { %v1166_v49 = vpop.f32.mrf.mxu0 }
 0x5d1   : > { %v1167_v50 = vadd.f32 %v1166_v49, %v1093_v5 }
 0x5d2   : > { %v1168_v51 = vpop.f32.mrf.mxu0 }
 0x5d3   : > { %2518 = vtanh.f32 %v1167_v50 }
 0x5d4   : > { %v1169_v52 = vpop.f32.mrf.mxu0 }
 0x5d5   : > { %v1170_v53 = vadd.f32 %v1169_v52, %v1098_v39 }
 0x5d6   : > { %v1171_v54 = vpop.f32.mrf.mxu0 }
 0x5d7   : > { %2520 = vtanh.f32 %v1170_v53 }
 0x5d8   : > { %v2515_v55 = vpop.eup %2514 }
 0x5d9   : > { %v1177_v56 = vsel %vm528_vm10, %v2515_v55, 0.0 }
 0x5da   : > { %1181 = vst [vmem:[%s3160_s15] sm:$0xff] %v1177_v56 }
 0x5dc   : > { %v2517_v57 = vpop.eup %2516 }
 0x5dd   : > { %v1178_v60 = vsel %vm528_vm10, %v2517_v57, 0.0 }
 0x5de   : > { %v2301_v61 = vpack.i.bf16 %v1178_v60, %v1177_v56  ;;  %1182 = vst [vmem:[%s3160_s15 + $0x8] sm:$0xff] %v1178_v60 }
 0x5e0   : > { %v2519_v62 = vpop.eup %2518  ;;  %2302 = vrot.lane.b32.xlu1 %v2301_v61, %s3634_s26 }
 0x5e1   : > { %v1179_v63 = vsel %vm528_vm10, %v2519_v62, 0.0 }
 0x5e2   : > { %1183 = vst [vmem:[%s3160_s15 + $0x10] sm:$0xff] %v1179_v63 }
 0x5e4   : > { %v2521_v7 = vpop.eup %2520 }
 0x5e5   : > { %v1180_v10 = vsel %vm528_vm10, %v2521_v7, 0.0 }
 0x5e6   : > { %v2296_v12 = vpack.i.bf16 %v1180_v10, %v1179_v63  ;;  %1184 = vst [vmem:[%s3160_s15 + $0x18] sm:$0xff] %v1180_v10  ;;  %s3412_s15 = scalar_lea.sflag [#allocation5], %s1637_s6 }
 0x5e8   : > { %2297 = vrot.lane.b32.xlu0 %v2296_v12, %s3634_s26 }
 0x652   : > { %v2303_v13 = vpop.permute.xlu1 %2302 }
 0x653   : > { %v3174_v14 = vunpack.i.h.bf16 %v2303_v13  ;;  %v3176_v16 = vunpack.i.l.bf16 %v2303_v13 }
 0x655   : > { %v1973_v17 = vpack.c.bf16 %v3174_v14, %v3176_v16  ;;  %v1202_v29 = vsel %vm534_vm0, 0.0, %v3174_v14  ;;  %v1206_v30 = vsel %vm534_vm0, %v3174_v14, 0.0  ;;  %v1201_v31 = vsel %vm534_vm0, 0.0, %v3176_v16  ;;  %v2493_v14 = vld [vmem:[%s3581_s4 + $0x14] ss:$8 sps:$4 sm:$0xff]  }
 0x656   : > { %v1205_v32 = vsel %vm534_vm0, %v3176_v16, 0.0  ;;  %v2321_v58 = vpack.i.bf16 %v1206_v30, %v1202_v29  ;;  %v2495_v16 = vld [vmem:[%s3581_s4 + $0x10] ss:$8 sps:$4 sm:$0xff]  }
 0x657   : > { %v2311_v59 = vpack.i.bf16 %v1205_v32, %v1201_v31 }
 0x65a   : > { %v2298_v18 = vpop.permute.xlu0 %2297 }
 0x65b   : > { %v3180_v19 = vunpack.i.h.bf16 %v2298_v18  ;;  %v3182_v21 = vunpack.i.l.bf16 %v2298_v18 }
 0x65d   : > { %v1204_v22 = vsel %vm534_vm0, 0.0, %v3180_v19  ;;  %v1208_v23 = vsel %vm534_vm0, %v3180_v19, 0.0  ;;  %v1203_v24 = vsel %vm534_vm0, 0.0, %v3182_v21  ;;  %v1207_v25 = vsel %vm534_vm0, %v3182_v21, 0.0 }
 0x65e   : > { %v1968_v27 = vpack.c.bf16 %v3180_v19, %v3182_v21  ;;  %v2306_v26 = vpack.i.bf16 %v1207_v25, %v1203_v24  ;;  %v2316_v28 = vpack.i.bf16 %v1208_v23, %v1204_v22 }
 0x660   : > { %2307 = vrot.lane.b32.xlu0 %v2306_v26, %s3635_s30  ;;  %2317 = vrot.lane.b32.xlu1 %v2316_v28, %s3635_s30 }
 0x664   : > { %2322 = vrot.lane.b32.xlu1 %v2321_v58, %s3635_s30  ;;  %2312 = vrot.lane.b32.xlu0 %v2311_v59, %s3635_s30 }
 0x668   : > { %2337 = vrot.lane.b32.xlu1 %v2316_v28, %s3636_s17  ;;  %2327 = vrot.lane.b32.xlu0 %v2306_v26, %s3636_s17 }
 0x66c   : > { %2342 = vrot.lane.b32.xlu1 %v2321_v58, %s3636_s17  ;;  %2332 = vrot.lane.b32.xlu0 %v2311_v59, %s3636_s17 }
 0x670   : > { %2357 = vrot.lane.b32.xlu1 %v2316_v28, %s3637_s20  ;;  %2347 = vrot.lane.b32.xlu0 %v2306_v26, %s3637_s20 }
 0x674   : > { %2362 = vrot.lane.b32.xlu1 %v2321_v58, %s3637_s20  ;;  %2352 = vrot.lane.b32.xlu0 %v2311_v59, %s3637_s20 }
 0x678   : > { %2377 = vrot.lane.b32.xlu1 %v2316_v28, %s3638_s23  ;;  %2367 = vrot.lane.b32.xlu0 %v2306_v26, %s3638_s23 }
 0x67c   : > { %2382 = vrot.lane.b32.xlu1 %v2321_v58, %s3638_s23  ;;  %2372 = vrot.lane.b32.xlu0 %v2311_v59, %s3638_s23 }
 0x680   : > { %1348 = vperm.xlu1 %2114, %v1330_v33   ;;  %1343 = vperm.xlu0 %2115, %v1329_v34  }
 0x684   : > { %1338 = vperm.xlu1 %2114, %v1328_v2   ;;  %1333 = vperm.xlu0 %2115, %v1327_v3  }
 0x6d2   : > { %v2308_v11 = vpop.permute.xlu0 %2307  ;;  %v2318_v35 = vpop.permute.xlu1 %2317 }
 0x6d3   : > { %v2310_v36 = vunpack.i.h.bf16 %v2308_v11  ;;  %v2309_v8 = vunpack.i.l.bf16 %v2308_v11  ;;  %v2320_v9 = vunpack.i.h.bf16 %v2318_v35  ;;  %v2319_v15 = vunpack.i.l.bf16 %v2318_v35 }
 0x6d5   : > { %v1283_v37 = vsel %vm557_vm6, %v2309_v8, %v2310_v36  ;;  %v1284_v38 = vsel %vm557_vm6, %v2319_v15, %v2320_v9 }
 0x6d6   : > { %v1324_v0 = vpack.c.bf16 %v1284_v38, %v1283_v37  ;;  %v2323_v4 = vpop.permute.xlu1 %2322  ;;  %v2313_v5 = vpop.permute.xlu0 %2312 }
 0x6d7   : > { %v2325_v39 = vunpack.i.h.bf16 %v2323_v4  ;;  %v2324_v40 = vunpack.i.l.bf16 %v2323_v4  ;;  %v2315_v41 = vunpack.i.h.bf16 %v2313_v5  ;;  %v2314_v42 = vunpack.i.l.bf16 %v2313_v5 }
 0x6d8   : > { %1376 = vmatpush1.bf16.msra.mxu1 %v1324_v0 }
 0x6d9   : > { %v1282_v43 = vsel %vm557_vm6, %v2324_v40, %v2325_v39  ;;  %v1281_v44 = vsel %vm557_vm6, %v2314_v42, %v2315_v41  ;;  %1377 = vmatprep.subr.bf16.mxu1 %v2709_v6  ;;  %v2490_v42 = vld [vmem:[%s3581_s4] ss:$8 sps:$4 sm:$0xff]  }
 0x6da   : > { %v1323_v45 = vpack.c.bf16 %v1282_v43, %v1281_v44  ;;  %v2338_v47 = vpop.permute.xlu1 %2337  ;;  %v2328_v48 = vpop.permute.xlu0 %2327 }
 0x6db   : > { %v2340_v49 = vunpack.i.h.bf16 %v2338_v47  ;;  %v2339_v50 = vunpack.i.l.bf16 %v2338_v47  ;;  %v2330_v51 = vunpack.i.h.bf16 %v2328_v48  ;;  %v2329_v52 = vunpack.i.l.bf16 %v2328_v48 }
 0x6dc   : > { %1378 = vmatpush1.bf16.msra.mxu1 %v1323_v45 }
 0x6dd   : > { %v1260_v53 = vsel %vm550_vm5, %v2339_v50, %v2340_v49  ;;  %v1259_v54 = vsel %vm550_vm5, %v2329_v52, %v2330_v51  ;;  %1379 = vmatprep.subr.bf16.mxu1 %v2709_v6 }
 0x6de   : > { %v1322_v55 = vpack.c.bf16 %v1260_v53, %v1259_v54  ;;  %v2343_v56 = vpop.permute.xlu1 %2342  ;;  %v2333_v57 = vpop.permute.xlu0 %2332 }
 0x6df   : > { %v2345_v60 = vunpack.i.h.bf16 %v2343_v56  ;;  %v2344_v61 = vunpack.i.l.bf16 %v2343_v56  ;;  %v2335_v62 = vunpack.i.h.bf16 %v2333_v57  ;;  %v2334_v63 = vunpack.i.l.bf16 %v2333_v57 }
 0x6e0   : > { %1380 = vmatpush1.bf16.msra.mxu1 %v1322_v55 }
 0x6e1   : > { %v1258_v7 = vsel %vm550_vm5, %v2344_v61, %v2345_v60  ;;  %v1257_v10 = vsel %vm550_vm5, %v2334_v63, %v2335_v62  ;;  %1381 = vmatprep.subr.bf16.mxu1 %v2709_v6 }
 0x6e2   : > { %v1321_v12 = vpack.c.bf16 %v1258_v7, %v1257_v10  ;;  %v2358_v13 = vpop.permute.xlu1 %2357  ;;  %v2348_v18 = vpop.permute.xlu0 %2347 }
 0x6e3   : > { %v2360_v22 = vunpack.i.h.bf16 %v2358_v13  ;;  %v2359_v23 = vunpack.i.l.bf16 %v2358_v13  ;;  %v2350_v24 = vunpack.i.h.bf16 %v2348_v18  ;;  %v2349_v25 = vunpack.i.l.bf16 %v2348_v18 }
 0x6e4   : > { %1382 = vmatpush1.bf16.msra.mxu1 %v1321_v12 }
 0x6e5   : > { %v1236_v26 = vsel %vm543_vm4, %v2359_v23, %v2360_v22  ;;  %v1235_v28 = vsel %vm543_vm4, %v2349_v25, %v2350_v24  ;;  %1383 = vmatprep.subr.bf16.mxu1 %v2709_v6 }
 0x6e6   : > { %v1320_v29 = vpack.c.bf16 %v1236_v26, %v1235_v28  ;;  %v2363_v30 = vpop.permute.xlu1 %2362  ;;  %v2353_v31 = vpop.permute.xlu0 %2352 }
 0x6e7   : > { %v2365_v32 = vunpack.i.h.bf16 %v2363_v30  ;;  %v2364_v58 = vunpack.i.l.bf16 %v2363_v30  ;;  %v2355_v59 = vunpack.i.h.bf16 %v2353_v31  ;;  %v2354_v1 = vunpack.i.l.bf16 %v2353_v31 }
 0x6e8   : > { %1384 = vmatpush1.bf16.msra.mxu1 %v1320_v29 }
 0x6e9   : > { %v1234_v33 = vsel %vm543_vm4, %v2364_v58, %v2365_v32  ;;  %v1233_v34 = vsel %vm543_vm4, %v2354_v1, %v2355_v59  ;;  %1385 = vmatprep.subr.bf16.mxu1 %v2709_v6 }
 0x6ea   : > { %v1319_v2 = vpack.c.bf16 %v1234_v33, %v1233_v34  ;;  %v2378_v3 = vpop.permute.xlu1 %2377  ;;  %v2368_v11 = vpop.permute.xlu0 %2367 }
 0x6eb   : > { %v2380_v35 = vunpack.i.h.bf16 %v2378_v3  ;;  %v2379_v36 = vunpack.i.l.bf16 %v2378_v3  ;;  %v2370_v8 = vunpack.i.h.bf16 %v2368_v11  ;;  %v2369_v9 = vunpack.i.l.bf16 %v2368_v11 }
 0x6ec   : > { %1386 = vmatpush1.bf16.msra.mxu1 %v1319_v2 }
 0x6ed   : > { %1387 = vmatprep.subr.bf16.mxu1 %v2709_v6  ;;  %v1308_v38 = vsel %vm564_vm2, %v2379_v36, %v2380_v35  ;;  %v1307_v0 = vsel %vm564_vm2, %v2369_v9, %v2370_v8 }
 0x6ee   : > { %v2383_v15 = vpop.permute.xlu1 %2382  ;;  %v2373_v37 = vpop.permute.xlu0 %2372  ;;  %v1326_v19 = vpack.c.bf16 %v1308_v38, %v1307_v0 }
 0x6ef   : > { %v2385_v4 = vunpack.i.h.bf16 %v2383_v15  ;;  %v2384_v5 = vunpack.i.l.bf16 %v2383_v15  ;;  %v2375_v39 = vunpack.i.h.bf16 %v2373_v37  ;;  %v2374_v40 = vunpack.i.l.bf16 %v2373_v37  ;;  %v3343_v15 = vld [vmem:[%s3582_s5] sm:$0xff] }
 0x6f0   : > { %1969 = vmatpush1.bf16.msk.msra.mxu1 %vm3001_vm12, %v1968_v27  ;;  %v1575_v37 = vld [vmem:[%s3587_s10] sm:$0xff]  ;;  %v1978_v38 = vcombine.high %v3343_v15, %v3343_v15 }
 0x6f1   : > { %1389 = vmatprep.subr.bf16.mxu1 %v2709_v6  ;;  %v1306_v21 = vsel %vm564_vm2, %v2384_v5, %v2385_v4  ;;  %v1305_v27 = vsel %vm564_vm2, %v2374_v40, %v2375_v39 }
 0x6f2   : > { %v1325_v41 = vpack.c.bf16 %v1306_v21, %v1305_v27  ;;  %1989 = vmatprep.mubr.msk.bf16.mxu0 %vm866_vm11, %v1978_v38 }
 0x6f4   : > { %1974 = vmatpush1.bf16.msk.msra.mxu1 %vm3001_vm12, %v1973_v17 }
 0x6f5   : > { %1403 = vmatprep.subr.bf16.mxu1 %v2709_v6 }
 0x6f8   : > { %1404 = vmatpush2.bf16.msra.mxu1 %v1326_v19 }
 0x6f9   : > { %1405 = vmatprep.subr.bf16.mxu1 %v2709_v6 }
 0x6fb   : > { %v1344_v17 = vpop.permute.xlu0 %1343  ;;  %v1349_v43 = vpop.permute.xlu1 %1348 }
 0x6fc   : > { %1406 = vmatpush2.bf16.msra.mxu1 %v1325_v41 }
 0x6ff   : > { %1408 = vmatmul.mubr.bf16.vlgmr.msra.gmra.mxu1 %v2490_v42  ;;  %v1334_v44 = vpop.permute.xlu0 %1333  ;;  %v1339_v49 = vpop.permute.xlu1 %1338 }
 0x700   : > { %1976 = vmatprep.mubr.msk.bf16.mxu1 %vm866_vm11, %v2493_v14 }
 0x707   : > { %1416 = vmatmul.mubr.bf16.gmra.mxu1 %v2495_v16 }
 0x7bf   : > { %v1409_v45 = vpop.f32.mrf.mxu1 }
 0x7c0   : > { %v1410_v47 = vadd.f32 %v1409_v45, %v1334_v44 }
 0x7c1   : > { %v1411_v48 = vpop.f32.mrf.mxu1 }
 0x7c2   : > { %2522 = vtanh.f32 %v1410_v47 }
 0x7c3   : > { %v1412_v50 = vpop.f32.mrf.mxu1 }
 0x7c4   : > { %v1413_v51 = vadd.f32 %v1412_v50, %v1339_v49 }
 0x7c5   : > { %v1414_v52 = vpop.f32.mrf.mxu1 }
 0x7c6   : > { %2524 = vtanh.f32 %v1413_v51 }
 0x7c7   : > { %v1417_v53 = vpop.f32.mrf.mxu1 }
 0x7c8   : > { %v1418_v54 = vadd.f32 %v1417_v53, %v1344_v17 }
 0x7c9   : > { %v1419_v55 = vpop.f32.mrf.mxu1 }
 0x7ca   : > { %2526 = vtanh.f32 %v1418_v54 }
 0x7cb   : > { %v1420_v56 = vpop.f32.mrf.mxu1 }
 0x7cc   : > { %v1421_v57 = vadd.f32 %v1420_v56, %v1349_v43 }
 0x7cd   : > { %v1422_v60 = vpop.f32.mrf.mxu1 }
 0x7ce   : > { %2528 = vtanh.f32 %v1421_v57 }
 0x7cf   : > { %v2523_v61 = vpop.eup %2522 }
 0x7d0   : > { %v1428_v62 = vsel %vm528_vm10, %v2523_v61, 0.0 }
 0x7d1   : > { %1432 = vst [vmem:[%s3282_s29] sm:$0xff] %v1428_v62 }
 0x7d3   : > { %v2525_v63 = vpop.eup %2524 }
 0x7d4   : > { %v1429_v7 = vsel %vm528_vm10, %v2525_v63, 0.0 }
 0x7d5   : > { %v2391_v10 = vpack.i.bf16 %v1429_v7, %v1428_v62  ;;  %1433 = vst [vmem:[%s3282_s29 + $0x8] sm:$0xff] %v1429_v7 }
 0x7d7   : > { %v2527_v12 = vpop.eup %2526  ;;  %2392 = vrot.lane.b32.xlu1 %v2391_v10, %s3634_s26 }
 0x7d8   : > { %v1430_v13 = vsel %vm528_vm10, %v2527_v12, 0.0 }
 0x7d9   : > { %1434 = vst [vmem:[%s3282_s29 + $0x10] sm:$0xff] %v1430_v13 }
 0x7db   : > { %v2529_v18 = vpop.eup %2528 }
 0x7dc   : > { %v1431_v22 = vsel %vm528_vm10, %v2529_v18, 0.0 }
 0x7dd   : > { %v2386_v23 = vpack.i.bf16 %v1431_v22, %v1430_v13  ;;  %1435 = vst [vmem:[%s3282_s29 + $0x18] sm:$0xff] %v1431_v22 }
 0x7df   : > { %2387 = vrot.lane.b32.xlu0 %v2386_v23, %s3634_s26 }
 0x849   : > { %v2393_v24 = vpop.permute.xlu1 %2392 }
 0x84a   : > { %v3296_v25 = vunpack.i.h.bf16 %v2393_v24  ;;  %v3298_v26 = vunpack.i.l.bf16 %v2393_v24 }
 0x84c   : > { %v1987_v28 = vpack.c.bf16 %v3296_v25, %v3298_v26  ;;  %v1453_v3 = vsel %vm534_vm0, 0.0, %v3296_v25  ;;  %v1457_v11 = vsel %vm534_vm0, %v3296_v25, 0.0  ;;  %v1452_v35 = vsel %vm534_vm0, 0.0, %v3298_v26 }
 0x84d   : > { %v1456_v36 = vsel %vm534_vm0, %v3298_v26, 0.0  ;;  %v2411_v8 = vpack.i.bf16 %v1457_v11, %v1453_v3  ;;  %v1977_v25 = vcombine.low %v3343_v15, %v3343_v15 }
 0x84e   : > { %v2401_v9 = vpack.i.bf16 %v1456_v36, %v1452_v35 }
 0x851   : > { %v2388_v29 = vpop.permute.xlu0 %2387 }
 0x852   : > { %v3302_v30 = vunpack.i.h.bf16 %v2388_v29  ;;  %v3304_v31 = vunpack.i.l.bf16 %v2388_v29 }
 0x854   : > { %v1455_v32 = vsel %vm534_vm0, 0.0, %v3302_v30  ;;  %v1459_v58 = vsel %vm534_vm0, %v3302_v30, 0.0  ;;  %v1454_v59 = vsel %vm534_vm0, 0.0, %v3304_v31  ;;  %v1458_v1 = vsel %vm534_vm0, %v3304_v31, 0.0 }
 0x855   : > { %v1982_v33 = vpack.c.bf16 %v3302_v30, %v3304_v31  ;;  %v2396_v34 = vpack.i.bf16 %v1458_v1, %v1454_v59  ;;  %v2406_v2 = vpack.i.bf16 %v1459_v58, %v1455_v32 }
 0x857   : > { %2397 = vrot.lane.b32.xlu0 %v2396_v34, %s3635_s30  ;;  %2407 = vrot.lane.b32.xlu1 %v2406_v2, %s3635_s30 }
 0x85b   : > { %2412 = vrot.lane.b32.xlu1 %v2411_v8, %s3635_s30  ;;  %2402 = vrot.lane.b32.xlu0 %v2401_v9, %s3635_s30 }
 0x85f   : > { %2427 = vrot.lane.b32.xlu1 %v2406_v2, %s3636_s17  ;;  %2417 = vrot.lane.b32.xlu0 %v2396_v34, %s3636_s17 }
 0x863   : > { %2432 = vrot.lane.b32.xlu1 %v2411_v8, %s3636_s17  ;;  %2422 = vrot.lane.b32.xlu0 %v2401_v9, %s3636_s17 }
 0x867   : > { %2447 = vrot.lane.b32.xlu1 %v2406_v2, %s3637_s20  ;;  %2437 = vrot.lane.b32.xlu0 %v2396_v34, %s3637_s20 }
 0x86b   : > { %2452 = vrot.lane.b32.xlu1 %v2411_v8, %s3637_s20  ;;  %2442 = vrot.lane.b32.xlu0 %v2401_v9, %s3637_s20  ;;  %s1666_s20 = sshll.u32 %s2907_s25, 4  ;;  %s3392_s20 = int_to_ptr.vmem [resolvable:$true] %s1666_s20 }
 0x86f   : > { %2467 = vrot.lane.b32.xlu1 %v2406_v2, %s3638_s23  ;;  %2457 = vrot.lane.b32.xlu0 %v2396_v34, %s3638_s23 }
 0x873   : > { %2472 = vrot.lane.b32.xlu1 %v2411_v8, %s3638_s23  ;;  %2462 = vrot.lane.b32.xlu0 %v2401_v9, %s3638_s23  ;;  %s1682_s23 = sshll.u32 %s3037_s24, 4  ;;  %s3408_s24 = scalar_lea.hbm %s3589_s12, %s3402_s3  ;;  %s3394_s23 = int_to_ptr.vmem [resolvable:$true] %s1682_s23 }
 0x874   : > { %s2530_s19 = scalar_lea.vmem %s3394_s23, 512  ;;  %p2537_p0 = scmp.lt.s32.totalorder %s3394_s23, %s2535_s2 }
 0x875   : > { %p2531_p11 = scmp.ne.s32.totalorder %s3394_s23, %s2530_s19  ;;  %p2538_p1 = scmp.lt.s32.totalorder %s2536_s7, %s2530_s19 }
 0x877   : > { %1578 = vperm.xlu0 %2115, %v1575_v37   ;;  %p2532_p12 = pnand %p2531_p11, %p2838_p5  ;;  %p2539_p2 = por %p2538_p1, %p2537_p0 }
 0x879   : > { %p2533_p13 = pneg %p2532_p12 }
 0x87b   : > { %p2540_p3 = pnand %p2539_p2, %p2533_p13 }
 0x8c9   : > { %v2398_v0 = vpop.permute.xlu0 %2397  ;;  %v2408_v4 = vpop.permute.xlu1 %2407 }
 0x8ca   : > { %v2400_v5 = vunpack.i.h.bf16 %v2398_v0  ;;  %v2399_v39 = vunpack.i.l.bf16 %v2398_v0  ;;  %v2410_v40 = vunpack.i.h.bf16 %v2408_v4  ;;  %v2409_v19 = vunpack.i.l.bf16 %v2408_v4 }
 0x8cc   : > { %v1534_v21 = vsel %vm557_vm6, %v2399_v39, %v2400_v5  ;;  %v1535_v27 = vsel %vm557_vm6, %v2409_v19, %v2410_v40 }
 0x8cd   : > { %v1572_v41 = vpack.c.bf16 %v1535_v27, %v1534_v21  ;;  %v2413_v42 = vpop.permute.xlu1 %2412  ;;  %v2403_v14 = vpop.permute.xlu0 %2402 }
 0x8ce   : > { %v2415_v16 = vunpack.i.h.bf16 %v2413_v42  ;;  %v2414_v17 = vunpack.i.l.bf16 %v2413_v42  ;;  %v2405_v43 = vunpack.i.h.bf16 %v2403_v14  ;;  %v2404_v44 = vunpack.i.l.bf16 %v2403_v14 }
 0x8cf   : > { %1591 = vmatpush1.bf16.msra.mxu0 %v1572_v41 }
 0x8d0   : > { %v1533_v45 = vsel %vm557_vm6, %v2414_v17, %v2415_v16  ;;  %v1532_v47 = vsel %vm557_vm6, %v2404_v44, %v2405_v43  ;;  %1592 = vmatprep.subr.bf16.mxu0 %v2709_v6 }
 0x8d1   : > { %v1571_v48 = vpack.c.bf16 %v1533_v45, %v1532_v47  ;;  %v2428_v49 = vpop.permute.xlu1 %2427  ;;  %v2418_v50 = vpop.permute.xlu0 %2417 }
 0x8d2   : > { %v2430_v51 = vunpack.i.h.bf16 %v2428_v49  ;;  %v2429_v52 = vunpack.i.l.bf16 %v2428_v49  ;;  %v2420_v53 = vunpack.i.h.bf16 %v2418_v50  ;;  %v2419_v54 = vunpack.i.l.bf16 %v2418_v50 }
 0x8d3   : > { %1593 = vmatpush1.bf16.msra.mxu0 %v1571_v48 }
 0x8d4   : > { %v1511_v55 = vsel %vm550_vm5, %v2429_v52, %v2430_v51  ;;  %v1510_v56 = vsel %vm550_vm5, %v2419_v54, %v2420_v53  ;;  %1594 = vmatprep.subr.bf16.mxu0 %v2709_v6 }
 0x8d5   : > { %v1570_v57 = vpack.c.bf16 %v1511_v55, %v1510_v56  ;;  %v2433_v60 = vpop.permute.xlu1 %2432  ;;  %v2423_v61 = vpop.permute.xlu0 %2422 }
 0x8d6   : > { %v2435_v62 = vunpack.i.h.bf16 %v2433_v60  ;;  %v2434_v63 = vunpack.i.l.bf16 %v2433_v60  ;;  %v2425_v7 = vunpack.i.h.bf16 %v2423_v61  ;;  %v2424_v10 = vunpack.i.l.bf16 %v2423_v61 }
 0x8d7   : > { %1595 = vmatpush1.bf16.msra.mxu0 %v1570_v57 }
 0x8d8   : > { %v1509_v12 = vsel %vm550_vm5, %v2434_v63, %v2435_v62  ;;  %v1508_v13 = vsel %vm550_vm5, %v2424_v10, %v2425_v7  ;;  %1596 = vmatprep.subr.bf16.mxu0 %v2709_v6 }
 0x8d9   : > { %v1569_v18 = vpack.c.bf16 %v1509_v12, %v1508_v13  ;;  %v2448_v22 = vpop.permute.xlu1 %2447  ;;  %v2438_v23 = vpop.permute.xlu0 %2437 }
 0x8da   : > { %v2450_v24 = vunpack.i.h.bf16 %v2448_v22  ;;  %v2449_v29 = vunpack.i.l.bf16 %v2448_v22  ;;  %v2440_v32 = vunpack.i.h.bf16 %v2438_v23  ;;  %v2439_v58 = vunpack.i.l.bf16 %v2438_v23 }
 0x8db   : > { %1597 = vmatpush1.bf16.msra.mxu0 %v1569_v18 }
 0x8dc   : > { %v1487_v59 = vsel %vm543_vm4, %v2449_v29, %v2450_v24  ;;  %v1486_v1 = vsel %vm543_vm4, %v2439_v58, %v2440_v32  ;;  %1598 = vmatprep.subr.bf16.mxu0 %v2709_v6 }
 0x8dd   : > { %v1568_v34 = vpack.c.bf16 %v1487_v59, %v1486_v1  ;;  %v2453_v2 = vpop.permute.xlu1 %2452  ;;  %v2443_v3 = vpop.permute.xlu0 %2442 }
 0x8de   : > { %v2455_v11 = vunpack.i.h.bf16 %v2453_v2  ;;  %v2454_v35 = vunpack.i.l.bf16 %v2453_v2  ;;  %v2445_v36 = vunpack.i.h.bf16 %v2443_v3  ;;  %v2444_v8 = vunpack.i.l.bf16 %v2443_v3 }
 0x8df   : > { %1599 = vmatpush1.bf16.msra.mxu0 %v1568_v34 }
 0x8e0   : > { %v1485_v9 = vsel %vm543_vm4, %v2454_v35, %v2455_v11  ;;  %v1484_v37 = vsel %vm543_vm4, %v2444_v8, %v2445_v36  ;;  %1600 = vmatprep.subr.bf16.mxu0 %v2709_v6 }
 0x8e1   : > { %v1567_v38 = vpack.c.bf16 %v1485_v9, %v1484_v37  ;;  %v2468_v0 = vpop.permute.xlu1 %2467  ;;  %v2458_v4 = vpop.permute.xlu0 %2457 }
 0x8e2   : > { %v2470_v5 = vunpack.i.h.bf16 %v2468_v0  ;;  %v2469_v39 = vunpack.i.l.bf16 %v2468_v0  ;;  %v2460_v40 = vunpack.i.h.bf16 %v2458_v4  ;;  %v2459_v19 = vunpack.i.l.bf16 %v2458_v4 }
 0x8e3   : > { %1601 = vmatpush1.bf16.msra.mxu0 %v1567_v38 }
 0x8e4   : > { %1602 = vmatprep.subr.bf16.mxu0 %v2709_v6  ;;  %v1559_v41 = vsel %vm564_vm2, %v2469_v39, %v2470_v5  ;;  %v1558_v42 = vsel %vm564_vm2, %v2459_v19, %v2460_v40 }
 0x8e5   : > { %v2473_v21 = vpop.permute.xlu1 %2472  ;;  %v2463_v27 = vpop.permute.xlu0 %2462  ;;  %v1574_v30 = vpack.c.bf16 %v1559_v41, %v1558_v42 }
 0x8e6   : > { %v2475_v14 = vunpack.i.h.bf16 %v2473_v21  ;;  %v2474_v16 = vunpack.i.l.bf16 %v2473_v21  ;;  %v2465_v17 = vunpack.i.h.bf16 %v2463_v27  ;;  %v2464_v43 = vunpack.i.l.bf16 %v2463_v27 }
 0x8e7   : > { %1983 = vmatpush1.bf16.msk.msra.mxu0 %vm3001_vm12, %v1982_v33 }
 0x8e8   : > { %1604 = vmatprep.subr.bf16.mxu0 %v2709_v6  ;;  %v1557_v31 = vsel %vm564_vm2, %v2474_v16, %v2475_v14  ;;  %v1556_v33 = vsel %vm564_vm2, %v2464_v43, %v2465_v17 }
 0x8e9   : > { %v1573_v44 = vpack.c.bf16 %v1557_v31, %v1556_v33 }
 0x8eb   : > { %1988 = vmatpush1.bf16.msk.msra.mxu0 %vm3001_vm12, %v1987_v28 }
 0x8ec   : > { %1618 = vmatprep.subr.bf16.mxu0 %v2709_v6 }
 0x8ef   : > { %1619 = vmatpush2.bf16.msra.mxu0 %v1574_v30 }
 0x8f0   : > { %1620 = vmatprep.subr.bf16.mxu0 %v2709_v6 }
 0x8f3   : > { %1621 = vmatpush2.bf16.msra.mxu0 %v1573_v44 }
 0x8f6   : > { %1623 = vmatmul.mubr.bf16.vlgmr.msra.gmra.mxu0 %v1977_v25 }
 0x8f7   : > { %2543 = shalt.err (!%p2540_p3)
}
 0x8f8   : > { %s2544_s29 = scalar_lea.hbm %s3408_s24, 512  ;;  %s2548_s30 = scalar_lea.hbm %s3589_s12, 1024 }
 0x8f9   : > { %p2545_p4 = scmp.ne.s32.totalorder %s3408_s24, %s2544_s29  ;;  %p2549_p9 = scmp.lt.s32.totalorder %s3408_s24, %s3589_s12 }
 0x8fa   : > { %p2550_p10 = scmp.lt.s32.totalorder %s2548_s30, %s2544_s29 }
 0x8fb   : > { %p2546_p7 = pnand %p2545_p4, %p2838_p5 }
 0x8fc   : > { %p2551_p11 = por %p2550_p10, %p2549_p9 }
 0x8fd   : > { %p2547_p8 = pneg %p2546_p7 }
 0x8ff   : > { %p2552_p12 = pnand %p2551_p11, %p2547_p8 }
 0x901   : > { %2555 = shalt.err (!%p2552_p12)
}
 0x902   : > { %s2712_s25 = smov 128   ;;  %s2713_s19 = smov 8  }
 0x903   : > { %2027 = dma.vmem_to_hbm [thread:$0]  (%p2838_p5), %s3394_s23, 512, %s3408_s24, %s3412_s15, %s2712_s25, %s2712_s25, %s2713_s19  }
 0x904   : > { %s3442_s7 = scalar_lea.hbm %s3591_s14, %s3402_s3  ;;  %s3446_s29 = scalar_lea.sflag [#allocation8], %s1637_s6 }
 0x905   : > { %s2556_s16 = scalar_lea.vmem %s3398_s1, 512  ;;  %s2714_s26 = smov [#allocation7]  }
 0x906   : > { %p2557_p13 = scmp.ne.s32.totalorder %s3398_s1, %s2556_s16  ;;  %s2560_s30 = sshll.u32 %s2714_s26, 4  ;;  %s2561_s30 = int_to_ptr.vmem [resolvable:$false] %s2560_s30 }
 0x907   : > { %s2562_s17 = scalar_lea.vmem %s2561_s30, 1024  ;;  %p2563_p2 = scmp.lt.s32.totalorder %s3398_s1, %s2561_s30 }
 0x908   : > { %p2558_p0 = pnand %p2557_p13, %p2838_p5  ;;  %p2564_p3 = scmp.lt.s32.totalorder %s2562_s17, %s2556_s16 }
 0x90a   : > { %p2559_p1 = pneg %p2558_p0  ;;  %p2565_p4 = por %p2564_p3, %p2563_p2 }
 0x90c   : > { %p2566_p7 = pnand %p2565_p4, %p2559_p1 }
 0x90e   : > { %2569 = shalt.err (!%p2566_p7)
}
 0x90f   : > { %s2570_s23 = scalar_lea.hbm %s3442_s7, 512  ;;  %s2574_s18 = scalar_lea.hbm %s3591_s14, 1024 }
 0x910   : > { %p2571_p8 = scmp.ne.s32.totalorder %s3442_s7, %s2570_s23  ;;  %p2575_p11 = scmp.lt.s32.totalorder %s3442_s7, %s3591_s14 }
 0x911   : > { %p2576_p12 = scmp.lt.s32.totalorder %s2574_s18, %s2570_s23 }
 0x912   : > { %p2572_p9 = pnand %p2571_p8, %p2838_p5 }
 0x913   : > { %p2577_p13 = por %p2576_p12, %p2575_p11 }
 0x914   : > { %p2573_p10 = pneg %p2572_p9 }
 0x916   : > { %p2578_p0 = pnand %p2577_p13, %p2573_p10 }
 0x918   : > { %2581 = shalt.err (!%p2578_p0)
}
 0x919   : > { %2029 = dma.vmem_to_hbm [thread:$0]  (%p2838_p5), %s3398_s1, 512, %s3442_s7, %s3446_s29, %s2712_s25, %s2712_s25, %s2713_s19  }
 0x91a   : > { %s3476_s30 = scalar_lea.hbm %s3588_s11, %s3402_s3  ;;  %s3482_s6 = scalar_lea.hbm %s3590_s13, %s3402_s3 }
 0x91b   : > { %s1633_s24 = scalar_lea.sflag [#allocation3], %s2896_s27  ;;  %s2582_s18 = scalar_lea.vmem %s3392_s20, 512 }
 0x91c   : > { %p2583_p1 = scmp.ne.s32.totalorder %s3392_s20, %s2582_s18  ;;  %s2715_s21 = smov [#allocation2]  }
 0x91d   : > { %s2586_s2 = sshll.u32 %s2715_s21, 4  ;;  %s2587_s2 = int_to_ptr.vmem [resolvable:$false] %s2586_s2 }
 0x91e   : > { %p2584_p2 = pnand %p2583_p1, %p2838_p5  ;;  %s2588_s1 = scalar_lea.vmem %s2587_s2, 1024 }
 0x91f   : > { %p2589_p4 = scmp.lt.s32.totalorder %s3392_s20, %s2587_s2  ;;  %p2590_p7 = scmp.lt.s32.totalorder %s2588_s1, %s2582_s18 }
 0x920   : > { %p2585_p3 = pneg %p2584_p2 }
 0x921   : > { %p2591_p8 = por %p2590_p7, %p2589_p4 }
 0x923   : > { %p2592_p9 = pnand %p2591_p8, %p2585_p3 }
 0x925   : > { %2595 = shalt.err (!%p2592_p9)
}
 0x926   : > { %s2596_s3 = scalar_lea.hbm %s3476_s30, 512  ;;  %s2600_s26 = scalar_lea.hbm %s3588_s11, 1024 }
 0x927   : > { %p2597_p10 = scmp.ne.s32.totalorder %s3476_s30, %s2596_s3  ;;  %p2601_p13 = scmp.lt.s32.totalorder %s3476_s30, %s3588_s11 }
 0x928   : > { %p2602_p0 = scmp.lt.s32.totalorder %s2600_s26, %s2596_s3 }
 0x929   : > { %p2598_p11 = pnand %p2597_p10, %p2838_p5 }
 0x92a   : > { %p2603_p1 = por %p2602_p0, %p2601_p13 }
 0x92b   : > { %p2599_p12 = pneg %p2598_p11 }
 0x92d   : > { %p2604_p2 = pnand %p2603_p1, %p2599_p12 }
 0x92f   : > { %2607 = shalt.err (!%p2604_p2)
}
 0x930   : > { %2026 = dma.vmem_to_hbm [thread:$0]  (%p2838_p5), %s3392_s20, 512, %s3476_s30, %s1633_s24, %s2712_s25, %s2712_s25, %s2713_s19  }
 0x931   : > { %s2608_s18 = scalar_lea.vmem %s3396_s0, 512  ;;  %s2716_s21 = smov [#allocation6]  }
 0x932   : > { %p2609_p3 = scmp.ne.s32.totalorder %s3396_s0, %s2608_s18  ;;  %s2612_s2 = sshll.u32 %s2716_s21, 4  ;;  %s2613_s2 = int_to_ptr.vmem [resolvable:$false] %s2612_s2 }
 0x933   : > { %s2614_s1 = scalar_lea.vmem %s2613_s2, 1024  ;;  %p2615_p8 = scmp.lt.s32.totalorder %s3396_s0, %s2613_s2 }
 0x934   : > { %p2610_p4 = pnand %p2609_p3, %p2838_p5  ;;  %p2616_p9 = scmp.lt.s32.totalorder %s2614_s1, %s2608_s18 }
 0x936   : > { %p2611_p7 = pneg %p2610_p4  ;;  %p2617_p10 = por %p2616_p9, %p2615_p8 }
 0x938   : > { %p2618_p11 = pnand %p2617_p10, %p2611_p7 }
 0x93a   : > { %2621 = shalt.err (!%p2618_p11)
}
 0x93b   : > { %s2622_s3 = scalar_lea.hbm %s3482_s6, 512  ;;  %s2626_s24 = scalar_lea.hbm %s3590_s13, 1024 }
 0x93c   : > { %p2623_p12 = scmp.ne.s32.totalorder %s3482_s6, %s2622_s3  ;;  %p2627_p1 = scmp.lt.s32.totalorder %s3482_s6, %s3590_s13 }
 0x93d   : > { %p2628_p2 = scmp.lt.s32.totalorder %s2626_s24, %s2622_s3 }
 0x93e   : > { %p2624_p13 = pnand %p2623_p12, %p2838_p5 }
 0x93f   : > { %p2629_p3 = por %p2628_p2, %p2627_p1 }
 0x940   : > { %p2625_p0 = pneg %p2624_p13 }
 0x942   : > { %p2630_p4 = pnand %p2629_p3, %p2625_p0 }
 0x944   : > { %2633 = shalt.err (!%p2630_p4)
}
 0x945   : > { %2028 = dma.vmem_to_hbm [thread:$0]  (%p2838_p5), %s3396_s0, 512, %s3482_s6, %s3412_s15, %s2712_s25, %s2712_s25, %s2713_s19   ;;  %v1579_v6 = vpop.permute.xlu0 %1578 }
 0x946   : > { %s1919_s26 = sshll.u32 %s2896_s27, 3  ;;  %s2003_s18 = sshll.u32 %s2819_s22, 7 }
 0x947   : > { %s520_s17 = scalar_lea.vmem [#allocation9], %s1919_s26  ;;  %s3644_s1 = sld [smem:[#allocation26_spill]] }
 0x948   : > { %s1730_s23 = sshll.u32 %s520_s17, 4  ;;  %s2717_s22 = smov [#allocation9]   ;;  %s1731_s23 = int_to_ptr.vmem [resolvable:$true] %s1730_s23 }
 0x949   : > { %s2634_s0 = scalar_lea.vmem %s1731_s23, 128  ;;  %s2638_s27 = sshll.u32 %s2717_s22, 4  ;;  %s2639_s27 = int_to_ptr.vmem [resolvable:$false] %s2638_s27 }
 0x94a   : > { %p2635_p7 = scmp.ne.s32.totalorder %s1731_s23, %s2634_s0  ;;  %s2640_s15 = scalar_lea.vmem %s2639_s27, 256 }
 0x94b   : > { %p2641_p10 = scmp.lt.s32.totalorder %s1731_s23, %s2639_s27  ;;  %p2642_p11 = scmp.lt.s32.totalorder %s2640_s15, %s2634_s0 }
 0x94c   : > { %p2636_p8 = pnand %p2635_p7, %p2838_p5 }
 0x94d   : > { %s3537_s3 = scalar_lea.hbm %s3644_s1, %s2003_s18  ;;  %p2643_p12 = por %p2642_p11, %p2641_p10 }
 0x94e   : > { %p2637_p9 = pneg %p2636_p8 }
 0x950   : > { %p2644_p13 = pnand %p2643_p12, %p2637_p9 }
 0x9b6   : > { %v1624_v20 = vpop.f32.mrf.mxu0 }
 0x9b7   : > { %v1625_v26 = vadd.f32 %v1624_v20, %v1579_v6 }
 0x9b8   : > { %v1626_v28 = vpop.f32.mrf.mxu0 }
 0x9b9   : > { %v1630_v15 = vsel %vm528_vm10, %v1625_v26, 0.0 }
 0x9ba   : > { %1631 = vst [vmem:[%s520_s17] sm:$0xff] %v1630_v15  ;;  %v1627_v45 = vpop.f32.mrf.mxu0 }
 0x9bb   : > { %2647 = shalt.err (!%p2644_p13)
}
 0x9bc   : > { %s2648_s25 = scalar_lea.hbm %s3537_s3, 128  ;;  %s2652_s20 = scalar_lea.hbm %s3644_s1, 256 }
 0x9bd   : > { %p2649_p0 = scmp.ne.s32.totalorder %s3537_s3, %s2648_s25  ;;  %p2653_p3 = scmp.lt.s32.totalorder %s3537_s3, %s3644_s1 }
 0x9be   : > { %p2654_p4 = scmp.lt.s32.totalorder %s2652_s20, %s2648_s25 }
 0x9bf   : > { %p2650_p1 = pnand %p2649_p0, %p2838_p5 }
 0x9c0   : > { %p2655_p7 = por %p2654_p4, %p2653_p3 }
 0x9c1   : > { %p2651_p2 = pneg %p2650_p1 }
 0x9c3   : > { %p2656_p8 = pnand %p2655_p7, %p2651_p2 }
 0x9c5   : > { %2659 = shalt.err (!%p2656_p8)
}
 0x9c6   : > { %2030 = dma.vmem_to_hbm [thread:$0]  (%p2838_p5), %s1731_s23, 128, %s3537_s3, %s3446_s29   ;;  %v1628_v46 = vpop.f32.mrf.mxu0 }
 0x9c7 PF: > { %s3645_s7 = sld [smem:[#allocation16_spill]] }
 0x9c8   : > { %s3646_s16 = sld [smem:[#allocation13_spill]] }
 0x9cd   : > { %p2052_p9 = scmp.ge.s32.totalorder %s3645_s7, 2 }
 0x9ce   : > { %s1742_s17 = sand.u32 1, %s3646_s16  }
 0x9cf   : > { %p2037_p10 = pnand %p2052_p9, %p2842_p6  ;;  %s1743_s18 = scalar_lea.sflag [#allocation3], %s1742_s17 }
 0x9d1   : > { %p2038_p11 = pneg %p2037_p10 }
 0x9d3   : > { %2677 = dma.done.wait (%p2038_p11), %s1743_s18, 512  }
 0x9d4   : > { %2679 = vsyncadd (%p2038_p11), %s1743_s18, 4294966784  ;;  %s3648_s21 = sadd.s32 4294967294, %s3645_s7  }
 0x9d5   : > { %s1751_s2 = sand.u32 1, %s3648_s21  }
 0x9d6   : > { %s1752_s28 = scalar_lea.sflag [#allocation5], %s1751_s2 }
 0x9d7   : > { %2681 = dma.done.wait (%p2038_p11), %s1752_s28, 1024  }
 0x9d8   : > { %2683 = vsyncadd (%p2038_p11), %s1752_s28, 4294966272  ;;  %s1770_s29 = scalar_lea.sflag [#allocation8], %s1751_s2 }
 0x9d9   : > { %2685 = dma.done.wait (%p2038_p11), %s1770_s29, 640  }
 0x9da   : > { %2687 = vsyncadd (%p2038_p11), %s1770_s29, 4294966656  ;;  %s3649_s21 = sld [smem:[#allocation17_spill]] }
 0x9db   : > { %s3650_s18 = sld [smem:[#allocation14_spill]] }
 0x9dc   : > { %s3651_s19 = sld [smem:[#allocation15_spill]] }
 0x9dd   : > { %s3652_s20 = sld [smem:[#allocation18_spill]] }
 0x9e0   : > { %p32_p5 = scmp.ge.s32.totalorder %s3649_s21, 4  }
 0x9e2   :  { %34 = sbr.rel (!%p32_p5) target bundleno = 15 (0xf), region = 163 }
 0x9e7   :  { %1784 = vsyncpa [#allocation3], 1 }
 0x9e8   :  { %1786 = vsyncpa [#allocation3 + $0x1], 1 }
 0x9e9   :  { %1787 = vsyncpa [#allocation5], 1 }
 0x9ea   :  { %1789 = vsyncpa [#allocation5 + $0x1], 1 }
 0x9eb   :  { %1790 = vsyncpa [#allocation8], 1 }
 0x9ec   :  { %1792 = vsyncpa [#allocation8 + $0x1], 1 }

</bundles_post_ra>
